<compile_context>
chip_gen: v6e
topology: v6e:2x2x1
jax: 0.10.0
libtpu: 0.0.40
codegen_flags: <defaults>
</compile_context>

<pallas_src>
import functools

import jax
import jax.numpy as jnp
import numpy as np
from jax.experimental import pallas as pl
from jax.experimental.pallas import tpu as pltpu


# ----------------------------- fused Pallas kernel ------------------------------


def _encoder_kernel(*refs, n_down, n_res, batch):
    """Whole SpatialEncoder forward, batch folded into the sublane axis.

    Activation layout: 2-D (B*H, W*C) with W*C on the lane axis; after the last downsample the
    tiny tail is flattened to (B, H*W*C).  Every conv is a small chain of bf16 MXU matmuls with
    f32 accumulation; no padding buffers, no in-kernel transposes.
    """
    it = iter(refs)
    x_ref = next(it)
    wp_ref = next(it)
    down = [(next(it), next(it)) for _ in range(n_down)]       # (stacked row-select, banded W)
    wres_ref = next(it)
    wfc_ref = next(it)
    bias_ref = next(it)
    out_ref = next(it)

    f32, bf16 = jnp.float32, jnp.bfloat16

    def mm(x, w):
        # bf16 x bf16 MXU matmul, f32 accumulation.
        return jnp.dot(x.astype(bf16), w.astype(bf16), preferred_element_type=f32)

    # --- project: 1x1 conv as one block-diagonal matmul (+bias, relu) ---
    n = wp_ref.shape[1]
    a = jnp.maximum(mm(x_ref[...], wp_ref[...]) + bias_ref[0:1, 0:n], 0.0)

    # --- stride-2 4x4 downsample convs: 1 stacked row-select matmul + kh banded matmuls ---
    for k, (s_ref, bw_ref) in enumerate(down):
        kh, _, n = bw_ref.shape
        m = s_ref.shape[0] // kh                                # rows per tap block (B*hout)
        t = mm(s_ref[...], a)                                   # (kh*m, win*cin), exact bf16 copies
        acc = mm(t[0:m], bw_ref[0])
        for i in range(1, kh):
            acc = acc + mm(t[i * m:(i + 1) * m], bw_ref[i])
        a = jnp.maximum(acc + bias_ref[k + 1:k + 2, 0:n], 0.0)

    # --- flatten the tiny tail (B*hf, wf*c) -> (B, hf*wf*c); last S was built oy-major ---
    hf = a.shape[0] // batch
    a = jnp.concatenate([a[i * batch:(i + 1) * batch, :] for i in range(hf)], axis=1)

    # --- residual blocks: each 3x3 conv is ONE dense (hf*wf*c, hf*wf*c) matmul ---
    nwc = a.shape[1]
    r0 = n_down + 1                                             # first resblock bias row
    skips = []
    for r in range(n_res):
        skips.append(a)
        h1 = jnp.maximum(mm(a, wres_ref[2 * r])
                         + bias_ref[r0 + 2 * r:r0 + 2 * r + 1, 0:nwc], 0.0)
        a = jnp.maximum(mm(h1, wres_ref[2 * r + 1])
                        + bias_ref[r0 + 2 * r + 1:r0 + 2 * r + 2, 0:nwc] + a, 0.0)

    # --- head: GAP folded into the pre-scaled, (hf*wf)-tiled FC weight ---
    fcn = wfc_ref.shape[1]
    fc_row = n_down + 1 + 2 * n_res
    y = jnp.maximum(mm(a, wfc_ref[...]) + bias_ref[fc_row:fc_row + 1, 0:fcn], 0.0)

    # --- pack skips + fc output into one lane-dense slab and store once ---
    pieces = skips + [y]
    used = n_res * nwc + fcn
    pad = out_ref.shape[1] - used
    if pad:
        pieces.append(jnp.zeros((batch, pad), f32))
    out_ref[...] = jnp.concatenate(pieces, axis=1).astype(out_ref.dtype)


# --------------------------- one-time weight expansion ---------------------------


def _expand_conv_w(w, win, stride, pad):
    """(kh,kw,cin,cout) conv weight -> (kh, win*cin, wout*cout) banded matmul weights.

    BW[i, x*cin+ci, ox*cout+co] = w[i, j, ci, co] with x = stride*ox + j - pad; taps whose x
    falls outside [0, win) are dropped, which implements zero padding along W.
    """
    kh, kw, cin, cout = w.shape
    wout = (win + 2 * pad - kw) // stride + 1
    out = np.zeros((kh, win * cin, wout * cout), np.float32)
    for i in range(kh):
        for j in range(kw):
            for ox in range(wout):
                x = stride * ox + j - pad
                if 0 <= x < win:
                    out[i, x * cin:(x + 1) * cin, ox * cout:(ox + 1) * cout] = w[i, j]
    return out


def _row_select_stacked(hin, kh, stride, pad, batch, oy_major=False):
    """Stacked 0/1 row-selection matrix S (kh*batch*hout, batch*hin) for the H direction.

    Tap block i of (S @ a) holds, for every (b, oy), input row y = stride*oy + i - pad of sample
    b (zero when out of range).  Rows inside a tap block are b-major by default, oy-major when
    oy_major=True (used for the last layer so the tail flatten is a plain lane concat).
    """
    hout = (hin + 2 * pad - kh) // stride + 1
    s = np.zeros((kh * batch * hout, batch * hin), np.float32)
    for i in range(kh):
        for b in range(batch):
            for oy in range(hout):
                y = stride * oy + i - pad
                if 0 <= y < hin:
                    r = i * batch * hout + (oy * batch + b if oy_major else b * hout + oy)
                    s[r, b * hin + y] = 1.0
    return s


def _res_dense_w(w, h, wd):
    """(3,3,c,c) resblock conv weight -> dense (h*wd*c, h*wd*c) matmul on the flattened map."""
    kh, kw, cin, cout = w.shape
    out = np.zeros((h * wd * cin, h * wd * cout), np.float32)
    for oy in range(h):
        for ox in range(wd):
            for ky in range(kh):
                for kx in range(kw):
                    y, x = oy + ky - kh // 2, ox + kx - kw // 2
                    if 0 <= y < h and 0 <= x < wd:
                        out[(y * wd + x) * cin:(y * wd + x + 1) * cin,
                            (oy * wd + ox) * cout:(oy * wd + ox + 1) * cout] = w[ky, kx]
    return out


def prepare_params(params, batch, height, width):
    """One-time (numpy) expansion of the module's weights into kernel-ready arrays."""
    bf16 = jnp.bfloat16
    wp = np.asarray(params['project']['w'], np.float32)             # (1,1,cin,cp)
    cp = wp.shape[3]
    n_down, n_res = len(params['down']), len(params['res'])

    n_rows = 1 + n_down + 2 * n_res + 1
    n_rows = ((n_rows + 7) // 8) * 8
    n_cols = ((max(128, width * cp) + 127) // 128) * 128
    bias = np.zeros((n_rows, n_cols), np.float32)
    bias[0, :width * cp] = np.tile(np.asarray(params['project']['b'], np.float32), width)

    down = []
    h, w, c = height, width, cp
    for k, dl in enumerate(params['down']):
        wk = np.asarray(dl['w'], np.float32)                         # (4,4,c,cout)
        cout = wk.shape[3]
        bw = _expand_conv_w(wk, w, 2, 1)                             # (4, w*c, wout*cout)
        sel = _row_select_stacked(h, 4, 2, 1, batch, oy_major=(k == n_down - 1))
        h, w = (h + 2 - 4) // 2 + 1, (w + 2 - 4) // 2 + 1
        bias[1 + k, :w * cout] = np.tile(np.asarray(dl['b'], np.float32), w)
        down.append((jnp.asarray(sel, bf16), jnp.asarray(bw, bf16)))
        c = cout

    wres = []
    for r, rb in enumerate(params['res']):
        for t, (wn, bn) in enumerate((('w1', 'b1'), ('w2', 'b2'))):
            wres.append(_res_dense_w(np.asarray(rb[wn], np.float32), h, w))
            bias[1 + n_down + 2 * r + t, :h * w * c] = np.tile(
                np.asarray(rb[bn], np.float32), h * w)
    wres = np.stack(wres)                                            # (2*n_res, h*w*c, h*w*c)

    wfc = np.tile(np.asarray(params['fc']['w'], np.float32), (h * w, 1)) / float(h * w)
    bias[1 + n_down + 2 * n_res, :wfc.shape[1]] = np.asarray(params['fc']['b'], np.float32)

    return {
        'wp': jnp.asarray(_expand_conv_w(wp, width, 1, 0)[0], bf16),   # (W*cin, W*cp)
        'down': down,                                                  # [(sel, banded W), ...]
        'wres': jnp.asarray(wres, bf16),
        'wfc': jnp.asarray(wfc, bf16),
        'bias': jnp.asarray(bias),                                     # f32 slab, one row/layer
    }


# ------------------------------- forward wrapper ---------------------------------


@jax.jit
def _forward_jit(prep, x_nchw):
    B, cin, H, W = x_nchw.shape
    n_down = len(prep['down'])
    n_res = prep['wres'].shape[0] // 2
    hf, wf = H // (2 ** n_down), W // (2 ** n_down)
    nwc = prep['wres'].shape[1]                                  # hf*wf*c of the tail
    cf = nwc // (hf * wf)
    fc_dim = prep['wfc'].shape[1]
    used = n_res * nwc + fc_dim
    out_w = max(128, ((used + 127) // 128) * 128)

    x2d = jnp.transpose(x_nchw, (0, 2, 3, 1)).reshape(B * H, W * cin)
    inputs = [x2d, prep['wp']]
    for sel, bw in prep['down']:
        inputs += [sel, bw]
    inputs += [prep['wres'], prep['wfc'], prep['bias']]

    def full_spec(arr):
        nd = arr.ndim

        def imap(i):
            return (0,) * nd

        return pl.BlockSpec(arr.shape, imap)

    kernel = functools.partial(_encoder_kernel, n_down=n_down, n_res=n_res, batch=B)
    slab = pl.pallas_call(
        kernel,
        out_shape=jax.ShapeDtypeStruct((B, out_w), x_nchw.dtype),
        grid=(1,),
        in_specs=[full_spec(a) for a in inputs],
        out_specs=pl.BlockSpec((B, out_w), lambda i: (0, 0)),
        compiler_params=pltpu.CompilerParams(dimension_semantics=("arbitrary",)),
    )(*inputs)

    out = slab[:, n_res * nwc:n_res * nwc + fc_dim]
    map_skip = [slab[:, r * nwc:(r + 1) * nwc].reshape(B, hf, wf, cf).transpose(0, 3, 1, 2)
                for r in range(n_res)]
    return out, map_skip


def spatial_encoder_forward(prep, x_nchw, map_size=None):
    """Mirrors SpatialEncoder._forward (tensor-input path, head_type='pool').

    map_size is accepted for API parity only; the reference _forward never uses it
    (it is only consumed by _top_left_crop, which _forward does not call).
    """
    del map_size
    return _forward_jit(prep, x_nchw)


# --------------------------- pure-JAX reference -----------------------------


def _conv_ref(x, w, b, stride, pad, relu=True, residual=None):
    y = jax.lax.conv_general_dilated(
        x, w, window_strides=(stride, stride),
        padding=((pad, pad), (pad, pad)),
        dimension_numbers=('NHWC', 'HWIO', 'NHWC'))
    y = y + b.reshape(1, 1, 1, -1)
    if residual is not None:
        y = y + residual
    return jnp.maximum(y, 0.0) if relu else y


def spatial_encoder_ref(params, x_nchw):
    x = jnp.transpose(x_nchw, (0, 2, 3, 1))
    x = _conv_ref(x, params['project']['w'], params['project']['b'], 1, 0)
    for dl in params['down']:
        x = _conv_ref(x, dl['w'], dl['b'], 2, 1)
    map_skip = []
    for rb in params['res']:
        map_skip.append(x)
        h = _conv_ref(x, rb['w1'], rb['b1'], 1, 1)
        x = _conv_ref(h, rb['w2'], rb['b2'], 1, 1, residual=x)
    pooled = jnp.mean(x, axis=(1, 2))
    out = jnp.maximum(pooled @ params['fc']['w'] + params['fc']['b'], 0.0)
    map_skip = [jnp.transpose(m, (0, 3, 1, 2)) for m in map_skip]
    return out, map_skip


# ------------------------------- parameters ---------------------------------


def init_params(key, cfg):
    def conv_init(k, kh, kw, cin, cout):
        k1, k2 = jax.random.split(k)
        scale = (2.0 / (kh * kw * cin)) ** 0.5
        return {'w': jax.random.normal(k1, (kh, kw, cin, cout), jnp.float32) * scale,
                'b': jax.random.normal(k2, (cout,), jnp.float32) * 0.01}

    keys = iter(jax.random.split(key, 16))
    params = {}
    params['project'] = conv_init(next(keys), 1, 1, cfg['input_dim'], cfg['project_dim'])
    dims = [cfg['project_dim']] + list(cfg['down_channels'])
    params['down'] = [conv_init(next(keys), 4, 4, dims[i], dims[i + 1])
                      for i in range(len(cfg['down_channels']))]
    dim = dims[-1]
    params['res'] = []
    for _ in range(cfg['resblock_num']):
        c1 = conv_init(next(keys), 3, 3, dim, dim)
        c2 = conv_init(next(keys), 3, 3, dim, dim)
        params['res'].append({'w1': c1['w'], 'b1': c1['b'],
                              'w2': c2['w'], 'b2': c2['b']})
    kf1, kf2 = jax.random.split(next(keys))
    params['fc'] = {
        'w': jax.random.normal(kf1, (dim, cfg['fc_dim']), jnp.float32) * (2.0 / dim) ** 0.5,
        'b': jax.random.normal(kf2, (cfg['fc_dim'],), jnp.float32) * 0.01,
    }
    return params


# ---------------------------------- main -------------------------------------


if __name__ == "__main__":
    cfg = dict(input_dim=4, project_dim=8, down_channels=[8, 16, 16],
               resblock_num=2, fc_dim=32)
    key = jax.random.PRNGKey(0)
    kp, kx = jax.random.split(key)
    params = init_params(kp, cfg)

    B, H, W = 2, 16, 16
    x = jax.random.normal(kx, (B, cfg['input_dim'], H, W), jnp.float32)
    map_size = [[H, W] for _ in range(B)]   # unused by _forward, kept for API parity

    prep = prepare_params(params, B, H, W)   # one-time weight expansion, off the hot path
    out, map_skip = spatial_encoder_forward(prep, x, map_size)
    jax.block_until_ready((out, map_skip))

    ref_out, ref_skip = spatial_encoder_ref(params, x)
    np.testing.assert_allclose(np.asarray(out), np.asarray(ref_out),
                               rtol=2e-2, atol=2e-2)
    for got, ref in zip(map_skip, ref_skip):
        np.testing.assert_allclose(np.asarray(got), np.asarray(ref),
                                   rtol=2e-2, atol=2e-2)
    assert out.shape == (B, cfg['fc_dim'])
    assert len(map_skip) == cfg['resblock_num']
    assert map_skip[0].shape == (B, cfg['down_channels'][-1], H // 8, W // 8)
    print("KERNEL_OK")
</pallas_src>

<mosaic_0001>
module attributes {stable_mosaic.version = 11 : i64} {
  func.func @_encoder_kernel(%arg0: i32, %arg1: memref<32x64xf32, #tpu.memory_space<vmem>>, %arg2: memref<64x128xbf16, #tpu.memory_space<vmem>>, %arg3: memref<64x32xbf16, #tpu.memory_space<vmem>>, %arg4: memref<4x128x64xbf16, #tpu.memory_space<vmem>>, %arg5: memref<32x16xbf16, #tpu.memory_space<vmem>>, %arg6: memref<4x64x64xbf16, #tpu.memory_space<vmem>>, %arg7: memref<16x8xbf16, #tpu.memory_space<vmem>>, %arg8: memref<4x64x32xbf16, #tpu.memory_space<vmem>>, %arg9: memref<4x64x64xbf16, #tpu.memory_space<vmem>>, %arg10: memref<64x32xbf16, #tpu.memory_space<vmem>>, %arg11: memref<16x128xf32, #tpu.memory_space<vmem>>, %arg12: memref<2x256xf32, #tpu.memory_space<vmem>>) attributes {dimension_semantics = [#tpu.dimension_semantics<arbitrary>], iteration_bounds = array<i64: 1>, scalar_prefetch = 0 : i64, scratch_operands = 0 : i64, tpu.core_type = #tpu.core_type<tc>, window_params = [{pipeline_mode = #tpu.pipeline_mode<synchronous>, transform_indices = @transform_0, window_bounds = array<i64: 32, 64>}, {pipeline_mode = #tpu.pipeline_mode<synchronous>, transform_indices = @transform_1, window_bounds = array<i64: 64, 128>}, {pipeline_mode = #tpu.pipeline_mode<synchronous>, transform_indices = @transform_2, window_bounds = array<i64: 64, 32>}, {pipeline_mode = #tpu.pipeline_mode<synchronous>, transform_indices = @transform_3, window_bounds = array<i64: 4, 128, 64>}, {pipeline_mode = #tpu.pipeline_mode<synchronous>, transform_indices = @transform_4, window_bounds = array<i64: 32, 16>}, {pipeline_mode = #tpu.pipeline_mode<synchronous>, transform_indices = @transform_5, window_bounds = array<i64: 4, 64, 64>}, {pipeline_mode = #tpu.pipeline_mode<synchronous>, transform_indices = @transform_6, window_bounds = array<i64: 16, 8>}, {pipeline_mode = #tpu.pipeline_mode<synchronous>, transform_indices = @transform_7, window_bounds = array<i64: 4, 64, 32>}, {pipeline_mode = #tpu.pipeline_mode<synchronous>, transform_indices = @transform_8, window_bounds = array<i64: 4, 64, 64>}, {pipeline_mode = #tpu.pipeline_mode<synchronous>, transform_indices = @transform_9, window_bounds = array<i64: 64, 32>}, {pipeline_mode = #tpu.pipeline_mode<synchronous>, transform_indices = @transform_10, window_bounds = array<i64: 16, 128>}, {pipeline_mode = #tpu.pipeline_mode<synchronous>, transform_indices = @transform_11, window_bounds = array<i64: 2, 256>}]} {
    %c0 = arith.constant 0 : index
    %c0_0 = arith.constant 0 : index
    %0 = vector.load %arg1[%c0, %c0_0] : memref<32x64xf32, #tpu.memory_space<vmem>>, vector<32x64xf32>
    %c0_1 = arith.constant 0 : index
    %c0_2 = arith.constant 0 : index
    %1 = vector.load %arg2[%c0_1, %c0_2] : memref<64x128xbf16, #tpu.memory_space<vmem>>, vector<64x128xbf16>
    %2 = arith.truncf %0 : vector<32x64xf32> to vector<32x64xbf16>
    %cst = arith.constant dense<0.000000e+00> : vector<32x128xf32>
    %3 = tpu.matmul %2, %1, %cst {dimension_numbers = #tpu.dot_dimension_numbers<[1], [0], [0], [1], [0, 0, 1, 1], [], []>} : vector<32x64xbf16>, vector<64x128xbf16>, vector<32x128xf32> -> vector<32x128xf32>
    %c0_3 = arith.constant 0 : index
    %c0_4 = arith.constant 0 : index
    %4 = vector.load %arg11[%c0_3, %c0_4] : memref<16x128xf32, #tpu.memory_space<vmem>>, vector<1x128xf32>
    %5 = vector.broadcast %4 : vector<1x128xf32> to vector<32x128xf32>
    %6 = arith.addf %3, %5 : vector<32x128xf32>
    %cst_5 = arith.constant 0.000000e+00 : f32
    %7 = vector.broadcast %cst_5 : f32 to vector<32x128xf32>
    %8 = arith.maximumf %6, %7 : vector<32x128xf32>
    %c0_6 = arith.constant 0 : index
    %c0_7 = arith.constant 0 : index
    %9 = vector.load %arg3[%c0_6, %c0_7] : memref<64x32xbf16, #tpu.memory_space<vmem>>, vector<64x32xbf16>
    %10 = arith.truncf %8 : vector<32x128xf32> to vector<32x128xbf16>
    %cst_8 = arith.constant dense<0.000000e+00> : vector<64x128xf32>
    %11 = tpu.matmul %9, %10, %cst_8 {dimension_numbers = #tpu.dot_dimension_numbers<[1], [0], [0], [1], [0, 0, 1, 1], [], []>} : vector<64x32xbf16>, vector<32x128xbf16>, vector<64x128xf32> -> vector<64x128xf32>
    %12 = vector.extract_strided_slice %11 {offsets = [0, 0], sizes = [16, 128], strides = [1, 1]} : vector<64x128xf32> to vector<16x128xf32>
    %c0_9 = arith.constant 0 : index
    %c0_10 = arith.constant 0 : index
    %c0_11 = arith.constant 0 : index
    %13 = vector.load %arg4[%c0_9, %c0_10, %c0_11] : memref<4x128x64xbf16, #tpu.memory_space<vmem>>, vector<1x128x64xbf16>
    %14 = vector.shape_cast %13 : vector<1x128x64xbf16> to vector<128x64xbf16>
    %15 = arith.truncf %12 : vector<16x128xf32> to vector<16x128xbf16>
    %cst_12 = arith.constant dense<0.000000e+00> : vector<16x64xf32>
    %16 = tpu.matmul %15, %14, %cst_12 {dimension_numbers = #tpu.dot_dimension_numbers<[1], [0], [0], [1], [0, 0, 1, 1], [], []>} : vector<16x128xbf16>, vector<128x64xbf16>, vector<16x64xf32> -> vector<16x64xf32>
    %17 = vector.extract_strided_slice %11 {offsets = [16, 0], sizes = [16, 128], strides = [1, 1]} : vector<64x128xf32> to vector<16x128xf32>
    %c1 = arith.constant 1 : index
    %c0_13 = arith.constant 0 : index
    %c0_14 = arith.constant 0 : index
    %18 = vector.load %arg4[%c1, %c0_13, %c0_14] : memref<4x128x64xbf16, #tpu.memory_space<vmem>>, vector<1x128x64xbf16>
    %19 = vector.shape_cast %18 : vector<1x128x64xbf16> to vector<128x64xbf16>
    %20 = arith.truncf %17 : vector<16x128xf32> to vector<16x128xbf16>
    %cst_15 = arith.constant dense<0.000000e+00> : vector<16x64xf32>
    %21 = tpu.matmul %20, %19, %cst_15 {dimension_numbers = #tpu.dot_dimension_numbers<[1], [0], [0], [1], [0, 0, 1, 1], [], []>} : vector<16x128xbf16>, vector<128x64xbf16>, vector<16x64xf32> -> vector<16x64xf32>
    %22 = arith.addf %16, %21 : vector<16x64xf32>
    %23 = vector.extract_strided_slice %11 {offsets = [32, 0], sizes = [16, 128], strides = [1, 1]} : vector<64x128xf32> to vector<16x128xf32>
    %c2 = arith.constant 2 : index
    %c0_16 = arith.constant 0 : index
    %c0_17 = arith.constant 0 : index
    %24 = vector.load %arg4[%c2, %c0_16, %c0_17] : memref<4x128x64xbf16, #tpu.memory_space<vmem>>, vector<1x128x64xbf16>
    %25 = vector.shape_cast %24 : vector<1x128x64xbf16> to vector<128x64xbf16>
    %26 = arith.truncf %23 : vector<16x128xf32> to vector<16x128xbf16>
    %cst_18 = arith.constant dense<0.000000e+00> : vector<16x64xf32>
    %27 = tpu.matmul %26, %25, %cst_18 {dimension_numbers = #tpu.dot_dimension_numbers<[1], [0], [0], [1], [0, 0, 1, 1], [], []>} : vector<16x128xbf16>, vector<128x64xbf16>, vector<16x64xf32> -> vector<16x64xf32>
    %28 = arith.addf %22, %27 : vector<16x64xf32>
    %29 = vector.extract_strided_slice %11 {offsets = [48, 0], sizes = [16, 128], strides = [1, 1]} : vector<64x128xf32> to vector<16x128xf32>
    %c3 = arith.constant 3 : index
    %c0_19 = arith.constant 0 : index
    %c0_20 = arith.constant 0 : index
    %30 = vector.load %arg4[%c3, %c0_19, %c0_20] : memref<4x128x64xbf16, #tpu.memory_space<vmem>>, vector<1x128x64xbf16>
    %31 = vector.shape_cast %30 : vector<1x128x64xbf16> to vector<128x64xbf16>
    %32 = arith.truncf %29 : vector<16x128xf32> to vector<16x128xbf16>
    %cst_21 = arith.constant dense<0.000000e+00> : vector<16x64xf32>
    %33 = tpu.matmul %32, %31, %cst_21 {dimension_numbers = #tpu.dot_dimension_numbers<[1], [0], [0], [1], [0, 0, 1, 1], [], []>} : vector<16x128xbf16>, vector<128x64xbf16>, vector<16x64xf32> -> vector<16x64xf32>
    %34 = arith.addf %28, %33 : vector<16x64xf32>
    %c1_22 = arith.constant 1 : index
    %c0_23 = arith.constant 0 : index
    %35 = vector.load %arg11[%c1_22, %c0_23] : memref<16x128xf32, #tpu.memory_space<vmem>>, vector<1x64xf32>
    %36 = vector.broadcast %35 : vector<1x64xf32> to vector<16x64xf32>
    %37 = arith.addf %34, %36 : vector<16x64xf32>
    %cst_24 = arith.constant 0.000000e+00 : f32
    %38 = vector.broadcast %cst_24 : f32 to vector<16x64xf32>
    %39 = arith.maximumf %37, %38 : vector<16x64xf32>
    %c0_25 = arith.constant 0 : index
    %c0_26 = arith.constant 0 : index
    %40 = vector.load %arg5[%c0_25, %c0_26] : memref<32x16xbf16, #tpu.memory_space<vmem>>, vector<32x16xbf16>
    %41 = arith.truncf %39 : vector<16x64xf32> to vector<16x64xbf16>
    %cst_27 = arith.constant dense<0.000000e+00> : vector<32x64xf32>
    %42 = tpu.matmul %40, %41, %cst_27 {dimension_numbers = #tpu.dot_dimension_numbers<[1], [0], [0], [1], [0, 0, 1, 1], [], []>} : vector<32x16xbf16>, vector<16x64xbf16>, vector<32x64xf32> -> vector<32x64xf32>
    %43 = vector.extract_strided_slice %42 {offsets = [0, 0], sizes = [8, 64], strides = [1, 1]} : vector<32x64xf32> to vector<8x64xf32>
    %c0_28 = arith.constant 0 : index
    %c0_29 = arith.constant 0 : index
    %c0_30 = arith.constant 0 : index
    %44 = vector.load %arg6[%c0_28, %c0_29, %c0_30] : memref<4x64x64xbf16, #tpu.memory_space<vmem>>, vector<1x64x64xbf16>
    %45 = vector.shape_cast %44 : vector<1x64x64xbf16> to vector<64x64xbf16>
    %46 = arith.truncf %43 : vector<8x64xf32> to vector<8x64xbf16>
    %cst_31 = arith.constant dense<0.000000e+00> : vector<8x64xf32>
    %47 = tpu.matmul %46, %45, %cst_31 {dimension_numbers = #tpu.dot_dimension_numbers<[1], [0], [0], [1], [0, 0, 1, 1], [], []>} : vector<8x64xbf16>, vector<64x64xbf16>, vector<8x64xf32> -> vector<8x64xf32>
    %48 = vector.extract_strided_slice %42 {offsets = [8, 0], sizes = [8, 64], strides = [1, 1]} : vector<32x64xf32> to vector<8x64xf32>
    %c1_32 = arith.constant 1 : index
    %c0_33 = arith.constant 0 : index
    %c0_34 = arith.constant 0 : index
    %49 = vector.load %arg6[%c1_32, %c0_33, %c0_34] : memref<4x64x64xbf16, #tpu.memory_space<vmem>>, vector<1x64x64xbf16>
    %50 = vector.shape_cast %49 : vector<1x64x64xbf16> to vector<64x64xbf16>
    %51 = arith.truncf %48 : vector<8x64xf32> to vector<8x64xbf16>
    %cst_35 = arith.constant dense<0.000000e+00> : vector<8x64xf32>
    %52 = tpu.matmul %51, %50, %cst_35 {dimension_numbers = #tpu.dot_dimension_numbers<[1], [0], [0], [1], [0, 0, 1, 1], [], []>} : vector<8x64xbf16>, vector<64x64xbf16>, vector<8x64xf32> -> vector<8x64xf32>
    %53 = arith.addf %47, %52 : vector<8x64xf32>
    %54 = vector.extract_strided_slice %42 {offsets = [16, 0], sizes = [8, 64], strides = [1, 1]} : vector<32x64xf32> to vector<8x64xf32>
    %c2_36 = arith.constant 2 : index
    %c0_37 = arith.constant 0 : index
    %c0_38 = arith.constant 0 : index
    %55 = vector.load %arg6[%c2_36, %c0_37, %c0_38] : memref<4x64x64xbf16, #tpu.memory_space<vmem>>, vector<1x64x64xbf16>
    %56 = vector.shape_cast %55 : vector<1x64x64xbf16> to vector<64x64xbf16>
    %57 = arith.truncf %54 : vector<8x64xf32> to vector<8x64xbf16>
    %cst_39 = arith.constant dense<0.000000e+00> : vector<8x64xf32>
    %58 = tpu.matmul %57, %56, %cst_39 {dimension_numbers = #tpu.dot_dimension_numbers<[1], [0], [0], [1], [0, 0, 1, 1], [], []>} : vector<8x64xbf16>, vector<64x64xbf16>, vector<8x64xf32> -> vector<8x64xf32>
    %59 = arith.addf %53, %58 : vector<8x64xf32>
    %60 = vector.extract_strided_slice %42 {offsets = [24, 0], sizes = [8, 64], strides = [1, 1]} : vector<32x64xf32> to vector<8x64xf32>
    %c3_40 = arith.constant 3 : index
    %c0_41 = arith.constant 0 : index
    %c0_42 = arith.constant 0 : index
    %61 = vector.load %arg6[%c3_40, %c0_41, %c0_42] : memref<4x64x64xbf16, #tpu.memory_space<vmem>>, vector<1x64x64xbf16>
    %62 = vector.shape_cast %61 : vector<1x64x64xbf16> to vector<64x64xbf16>
    %63 = arith.truncf %60 : vector<8x64xf32> to vector<8x64xbf16>
    %cst_43 = arith.constant dense<0.000000e+00> : vector<8x64xf32>
    %64 = tpu.matmul %63, %62, %cst_43 {dimension_numbers = #tpu.dot_dimension_numbers<[1], [0], [0], [1], [0, 0, 1, 1], [], []>} : vector<8x64xbf16>, vector<64x64xbf16>, vector<8x64xf32> -> vector<8x64xf32>
    %65 = arith.addf %59, %64 : vector<8x64xf32>
    %c2_44 = arith.constant 2 : index
    %c0_45 = arith.constant 0 : index
    %66 = vector.load %arg11[%c2_44, %c0_45] : memref<16x128xf32, #tpu.memory_space<vmem>>, vector<1x64xf32>
    %67 = vector.broadcast %66 : vector<1x64xf32> to vector<8x64xf32>
    %68 = arith.addf %65, %67 : vector<8x64xf32>
    %cst_46 = arith.constant 0.000000e+00 : f32
    %69 = vector.broadcast %cst_46 : f32 to vector<8x64xf32>
    %70 = arith.maximumf %68, %69 : vector<8x64xf32>
    %c0_47 = arith.constant 0 : index
    %c0_48 = arith.constant 0 : index
    %71 = vector.load %arg7[%c0_47, %c0_48] : memref<16x8xbf16, #tpu.memory_space<vmem>>, vector<16x8xbf16>
    %72 = arith.truncf %70 : vector<8x64xf32> to vector<8x64xbf16>
    %cst_49 = arith.constant dense<0.000000e+00> : vector<16x64xf32>
    %73 = tpu.matmul %71, %72, %cst_49 {dimension_numbers = #tpu.dot_dimension_numbers<[1], [0], [0], [1], [0, 0, 1, 1], [], []>} : vector<16x8xbf16>, vector<8x64xbf16>, vector<16x64xf32> -> vector<16x64xf32>
    %74 = vector.extract_strided_slice %73 {offsets = [0, 0], sizes = [4, 64], strides = [1, 1]} : vector<16x64xf32> to vector<4x64xf32>
    %c0_50 = arith.constant 0 : index
    %c0_51 = arith.constant 0 : index
    %c0_52 = arith.constant 0 : index
    %75 = vector.load %arg8[%c0_50, %c0_51, %c0_52] : memref<4x64x32xbf16, #tpu.memory_space<vmem>>, vector<1x64x32xbf16>
    %76 = vector.shape_cast %75 : vector<1x64x32xbf16> to vector<64x32xbf16>
    %77 = arith.truncf %74 : vector<4x64xf32> to vector<4x64xbf16>
    %cst_53 = arith.constant dense<0.000000e+00> : vector<4x32xf32>
    %78 = tpu.matmul %77, %76, %cst_53 {dimension_numbers = #tpu.dot_dimension_numbers<[1], [0], [0], [1], [0, 0, 1, 1], [], []>} : vector<4x64xbf16>, vector<64x32xbf16>, vector<4x32xf32> -> vector<4x32xf32>
    %79 = vector.extract_strided_slice %73 {offsets = [4, 0], sizes = [4, 64], strides = [1, 1]} : vector<16x64xf32> to vector<4x64xf32>
    %c1_54 = arith.constant 1 : index
    %c0_55 = arith.constant 0 : index
    %c0_56 = arith.constant 0 : index
    %80 = vector.load %arg8[%c1_54, %c0_55, %c0_56] : memref<4x64x32xbf16, #tpu.memory_space<vmem>>, vector<1x64x32xbf16>
    %81 = vector.shape_cast %80 : vector<1x64x32xbf16> to vector<64x32xbf16>
    %82 = arith.truncf %79 : vector<4x64xf32> to vector<4x64xbf16>
    %cst_57 = arith.constant dense<0.000000e+00> : vector<4x32xf32>
    %83 = tpu.matmul %82, %81, %cst_57 {dimension_numbers = #tpu.dot_dimension_numbers<[1], [0], [0], [1], [0, 0, 1, 1], [], []>} : vector<4x64xbf16>, vector<64x32xbf16>, vector<4x32xf32> -> vector<4x32xf32>
    %84 = arith.addf %78, %83 : vector<4x32xf32>
    %85 = vector.extract_strided_slice %73 {offsets = [8, 0], sizes = [4, 64], strides = [1, 1]} : vector<16x64xf32> to vector<4x64xf32>
    %c2_58 = arith.constant 2 : index
    %c0_59 = arith.constant 0 : index
    %c0_60 = arith.constant 0 : index
    %86 = vector.load %arg8[%c2_58, %c0_59, %c0_60] : memref<4x64x32xbf16, #tpu.memory_space<vmem>>, vector<1x64x32xbf16>
    %87 = vector.shape_cast %86 : vector<1x64x32xbf16> to vector<64x32xbf16>
    %88 = arith.truncf %85 : vector<4x64xf32> to vector<4x64xbf16>
    %cst_61 = arith.constant dense<0.000000e+00> : vector<4x32xf32>
    %89 = tpu.matmul %88, %87, %cst_61 {dimension_numbers = #tpu.dot_dimension_numbers<[1], [0], [0], [1], [0, 0, 1, 1], [], []>} : vector<4x64xbf16>, vector<64x32xbf16>, vector<4x32xf32> -> vector<4x32xf32>
    %90 = arith.addf %84, %89 : vector<4x32xf32>
    %91 = vector.extract_strided_slice %73 {offsets = [12, 0], sizes = [4, 64], strides = [1, 1]} : vector<16x64xf32> to vector<4x64xf32>
    %c3_62 = arith.constant 3 : index
    %c0_63 = arith.constant 0 : index
    %c0_64 = arith.constant 0 : index
    %92 = vector.load %arg8[%c3_62, %c0_63, %c0_64] : memref<4x64x32xbf16, #tpu.memory_space<vmem>>, vector<1x64x32xbf16>
    %93 = vector.shape_cast %92 : vector<1x64x32xbf16> to vector<64x32xbf16>
    %94 = arith.truncf %91 : vector<4x64xf32> to vector<4x64xbf16>
    %cst_65 = arith.constant dense<0.000000e+00> : vector<4x32xf32>
    %95 = tpu.matmul %94, %93, %cst_65 {dimension_numbers = #tpu.dot_dimension_numbers<[1], [0], [0], [1], [0, 0, 1, 1], [], []>} : vector<4x64xbf16>, vector<64x32xbf16>, vector<4x32xf32> -> vector<4x32xf32>
    %96 = arith.addf %90, %95 : vector<4x32xf32>
    %c3_66 = arith.constant 3 : index
    %c0_67 = arith.constant 0 : index
    %97 = vector.load %arg11[%c3_66, %c0_67] : memref<16x128xf32, #tpu.memory_space<vmem>>, vector<1x32xf32>
    %98 = vector.broadcast %97 : vector<1x32xf32> to vector<4x32xf32>
    %99 = arith.addf %96, %98 : vector<4x32xf32>
    %cst_68 = arith.constant 0.000000e+00 : f32
    %100 = vector.broadcast %cst_68 : f32 to vector<4x32xf32>
    %101 = arith.maximumf %99, %100 : vector<4x32xf32>
    %102 = vector.extract_strided_slice %101 {offsets = [0, 0], sizes = [2, 32], strides = [1, 1]} : vector<4x32xf32> to vector<2x32xf32>
    %103 = vector.extract_strided_slice %101 {offsets = [2, 0], sizes = [2, 32], strides = [1, 1]} : vector<4x32xf32> to vector<2x32xf32>
    %104 = tpu.concatenate %102, %103 in 1 : vector<2x32xf32>, vector<2x32xf32> -> vector<2x64xf32>
    %c0_69 = arith.constant 0 : index
    %c0_70 = arith.constant 0 : index
    %c0_71 = arith.constant 0 : index
    %105 = vector.load %arg9[%c0_69, %c0_70, %c0_71] : memref<4x64x64xbf16, #tpu.memory_space<vmem>>, vector<1x64x64xbf16>
    %106 = vector.shape_cast %105 : vector<1x64x64xbf16> to vector<64x64xbf16>
    %107 = arith.truncf %104 : vector<2x64xf32> to vector<2x64xbf16>
    %cst_72 = arith.constant dense<0.000000e+00> : vector<2x64xf32>
    %108 = tpu.matmul %107, %106, %cst_72 {dimension_numbers = #tpu.dot_dimension_numbers<[1], [0], [0], [1], [0, 0, 1, 1], [], []>} : vector<2x64xbf16>, vector<64x64xbf16>, vector<2x64xf32> -> vector<2x64xf32>
    %c4 = arith.constant 4 : index
    %c0_73 = arith.constant 0 : index
    %109 = vector.load %arg11[%c4, %c0_73] : memref<16x128xf32, #tpu.memory_space<vmem>>, vector<1x64xf32>
    %110 = vector.broadcast %109 : vector<1x64xf32> to vector<2x64xf32>
    %111 = arith.addf %108, %110 : vector<2x64xf32>
    %cst_74 = arith.constant 0.000000e+00 : f32
    %112 = vector.broadcast %cst_74 : f32 to vector<2x64xf32>
    %113 = arith.maximumf %111, %112 : vector<2x64xf32>
    %c1_75 = arith.constant 1 : index
    %c0_76 = arith.constant 0 : index
    %c0_77 = arith.constant 0 : index
    %114 = vector.load %arg9[%c1_75, %c0_76, %c0_77] : memref<4x64x64xbf16, #tpu.memory_space<vmem>>, vector<1x64x64xbf16>
    %115 = vector.shape_cast %114 : vector<1x64x64xbf16> to vector<64x64xbf16>
    %116 = arith.truncf %113 : vector<2x64xf32> to vector<2x64xbf16>
    %cst_78 = arith.constant dense<0.000000e+00> : vector<2x64xf32>
    %117 = tpu.matmul %116, %115, %cst_78 {dimension_numbers = #tpu.dot_dimension_numbers<[1], [0], [0], [1], [0, 0, 1, 1], [], []>} : vector<2x64xbf16>, vector<64x64xbf16>, vector<2x64xf32> -> vector<2x64xf32>
    %c5 = arith.constant 5 : index
    %c0_79 = arith.constant 0 : index
    %118 = vector.load %arg11[%c5, %c0_79] : memref<16x128xf32, #tpu.memory_space<vmem>>, vector<1x64xf32>
    %119 = vector.broadcast %118 : vector<1x64xf32> to vector<2x64xf32>
    %120 = arith.addf %117, %119 : vector<2x64xf32>
    %121 = arith.addf %120, %104 : vector<2x64xf32>
    %cst_80 = arith.constant 0.000000e+00 : f32
    %122 = vector.broadcast %cst_80 : f32 to vector<2x64xf32>
    %123 = arith.maximumf %121, %122 : vector<2x64xf32>
    %c2_81 = arith.constant 2 : index
    %c0_82 = arith.constant 0 : index
    %c0_83 = arith.constant 0 : index
    %124 = vector.load %arg9[%c2_81, %c0_82, %c0_83] : memref<4x64x64xbf16, #tpu.memory_space<vmem>>, vector<1x64x64xbf16>
    %125 = vector.shape_cast %124 : vector<1x64x64xbf16> to vector<64x64xbf16>
    %126 = arith.truncf %123 : vector<2x64xf32> to vector<2x64xbf16>
    %cst_84 = arith.constant dense<0.000000e+00> : vector<2x64xf32>
    %127 = tpu.matmul %126, %125, %cst_84 {dimension_numbers = #tpu.dot_dimension_numbers<[1], [0], [0], [1], [0, 0, 1, 1], [], []>} : vector<2x64xbf16>, vector<64x64xbf16>, vector<2x64xf32> -> vector<2x64xf32>
    %c6 = arith.constant 6 : index
    %c0_85 = arith.constant 0 : index
    %128 = vector.load %arg11[%c6, %c0_85] : memref<16x128xf32, #tpu.memory_space<vmem>>, vector<1x64xf32>
    %129 = vector.broadcast %128 : vector<1x64xf32> to vector<2x64xf32>
    %130 = arith.addf %127, %129 : vector<2x64xf32>
    %cst_86 = arith.constant 0.000000e+00 : f32
    %131 = vector.broadcast %cst_86 : f32 to vector<2x64xf32>
    %132 = arith.maximumf %130, %131 : vector<2x64xf32>
    %c3_87 = arith.constant 3 : index
    %c0_88 = arith.constant 0 : index
    %c0_89 = arith.constant 0 : index
    %133 = vector.load %arg9[%c3_87, %c0_88, %c0_89] : memref<4x64x64xbf16, #tpu.memory_space<vmem>>, vector<1x64x64xbf16>
    %134 = vector.shape_cast %133 : vector<1x64x64xbf16> to vector<64x64xbf16>
    %135 = arith.truncf %132 : vector<2x64xf32> to vector<2x64xbf16>
    %cst_90 = arith.constant dense<0.000000e+00> : vector<2x64xf32>
    %136 = tpu.matmul %135, %134, %cst_90 {dimension_numbers = #tpu.dot_dimension_numbers<[1], [0], [0], [1], [0, 0, 1, 1], [], []>} : vector<2x64xbf16>, vector<64x64xbf16>, vector<2x64xf32> -> vector<2x64xf32>
    %c7 = arith.constant 7 : index
    %c0_91 = arith.constant 0 : index
    %137 = vector.load %arg11[%c7, %c0_91] : memref<16x128xf32, #tpu.memory_space<vmem>>, vector<1x64xf32>
    %138 = vector.broadcast %137 : vector<1x64xf32> to vector<2x64xf32>
    %139 = arith.addf %136, %138 : vector<2x64xf32>
    %140 = arith.addf %139, %123 : vector<2x64xf32>
    %cst_92 = arith.constant 0.000000e+00 : f32
    %141 = vector.broadcast %cst_92 : f32 to vector<2x64xf32>
    %142 = arith.maximumf %140, %141 : vector<2x64xf32>
    %c0_93 = arith.constant 0 : index
    %c0_94 = arith.constant 0 : index
    %143 = vector.load %arg10[%c0_93, %c0_94] : memref<64x32xbf16, #tpu.memory_space<vmem>>, vector<64x32xbf16>
    %144 = arith.truncf %142 : vector<2x64xf32> to vector<2x64xbf16>
    %cst_95 = arith.constant dense<0.000000e+00> : vector<2x32xf32>
    %145 = tpu.matmul %144, %143, %cst_95 {dimension_numbers = #tpu.dot_dimension_numbers<[1], [0], [0], [1], [0, 0, 1, 1], [], []>} : vector<2x64xbf16>, vector<64x32xbf16>, vector<2x32xf32> -> vector<2x32xf32>
    %c8 = arith.constant 8 : index
    %c0_96 = arith.constant 0 : index
    %146 = vector.load %arg11[%c8, %c0_96] : memref<16x128xf32, #tpu.memory_space<vmem>>, vector<1x32xf32>
    %147 = vector.broadcast %146 : vector<1x32xf32> to vector<2x32xf32>
    %148 = arith.addf %145, %147 : vector<2x32xf32>
    %cst_97 = arith.constant 0.000000e+00 : f32
    %149 = vector.broadcast %cst_97 : f32 to vector<2x32xf32>
    %150 = arith.maximumf %148, %149 : vector<2x32xf32>
    %cst_98 = arith.constant 0.000000e+00 : f32
    %151 = vector.broadcast %cst_98 : f32 to vector<2x96xf32>
    %152 = tpu.concatenate %104, %123, %150, %151 in 1 : vector<2x64xf32>, vector<2x64xf32>, vector<2x32xf32>, vector<2x96xf32> -> vector<2x256xf32>
    %c0_99 = arith.constant 0 : index
    %c0_100 = arith.constant 0 : index
    %153 = vector.load %arg12[%c0_99, %c0_100] : memref<2x256xf32, #tpu.memory_space<vmem>>, vector<2x256xf32>
    tpu.vector_store %arg12[%c0_99, %c0_100], %152 {strides = array<i32>} : memref<2x256xf32, #tpu.memory_space<vmem>>, vector<2x256xf32>,
    return
  }
  func.func @transform_0(%arg0: i32) -> (i32, i32) {
    %c0_i32 = arith.constant 0 : i32
    %c0_i32_0 = arith.constant 0 : i32
    %c0_i32_1 = arith.constant 0 : i32
    return %c0_i32, %c0_i32_0 : i32, i32
  }
  func.func @transform_1(%arg0: i32) -> (i32, i32) {
    %c0_i32 = arith.constant 0 : i32
    %c0_i32_0 = arith.constant 0 : i32
    %c0_i32_1 = arith.constant 0 : i32
    return %c0_i32, %c0_i32_0 : i32, i32
  }
  func.func @transform_2(%arg0: i32) -> (i32, i32) {
    %c0_i32 = arith.constant 0 : i32
    %c0_i32_0 = arith.constant 0 : i32
    %c0_i32_1 = arith.constant 0 : i32
    return %c0_i32, %c0_i32_0 : i32, i32
  }
  func.func @transform_3(%arg0: i32) -> (i32, i32, i32) {
    %c0_i32 = arith.constant 0 : i32
    %c0_i32_0 = arith.constant 0 : i32
    %c0_i32_1 = arith.constant 0 : i32
    %c0_i32_2 = arith.constant 0 : i32
    return %c0_i32, %c0_i32_0, %c0_i32_1 : i32, i32, i32
  }
  func.func @transform_4(%arg0: i32) -> (i32, i32) {
    %c0_i32 = arith.constant 0 : i32
    %c0_i32_0 = arith.constant 0 : i32
    %c0_i32_1 = arith.constant 0 : i32
    return %c0_i32, %c0_i32_0 : i32, i32
  }
  func.func @transform_5(%arg0: i32) -> (i32, i32, i32) {
    %c0_i32 = arith.constant 0 : i32
    %c0_i32_0 = arith.constant 0 : i32
    %c0_i32_1 = arith.constant 0 : i32
    %c0_i32_2 = arith.constant 0 : i32
    return %c0_i32, %c0_i32_0, %c0_i32_1 : i32, i32, i32
  }
  func.func @transform_6(%arg0: i32) -> (i32, i32) {
    %c0_i32 = arith.constant 0 : i32
    %c0_i32_0 = arith.constant 0 : i32
    %c0_i32_1 = arith.constant 0 : i32
    return %c0_i32, %c0_i32_0 : i32, i32
  }
  func.func @transform_7(%arg0: i32) -> (i32, i32, i32) {
    %c0_i32 = arith.constant 0 : i32
    %c0_i32_0 = arith.constant 0 : i32
    %c0_i32_1 = arith.constant 0 : i32
    %c0_i32_2 = arith.constant 0 : i32
    return %c0_i32, %c0_i32_0, %c0_i32_1 : i32, i32, i32
  }
  func.func @transform_8(%arg0: i32) -> (i32, i32, i32) {
    %c0_i32 = arith.constant 0 : i32
    %c0_i32_0 = arith.constant 0 : i32
    %c0_i32_1 = arith.constant 0 : i32
    %c0_i32_2 = arith.constant 0 : i32
    return %c0_i32, %c0_i32_0, %c0_i32_1 : i32, i32, i32
  }
  func.func @transform_9(%arg0: i32) -> (i32, i32) {
    %c0_i32 = arith.constant 0 : i32
    %c0_i32_0 = arith.constant 0 : i32
    %c0_i32_1 = arith.constant 0 : i32
    return %c0_i32, %c0_i32_0 : i32, i32
  }
  func.func @transform_10(%arg0: i32) -> (i32, i32) {
    %c0_i32 = arith.constant 0 : i32
    %c0_i32_0 = arith.constant 0 : i32
    %c0_i32_1 = arith.constant 0 : i32
    return %c0_i32, %c0_i32_0 : i32, i32
  }
  func.func @transform_11(%arg0: i32) -> (i32, i32) {
    %c0_i32 = arith.constant 0 : i32
    %c0_i32_0 = arith.constant 0 : i32
    %c0_i32_1 = arith.constant 0 : i32
    return %c0_i32, %c0_i32_0 : i32, i32
  }
}

</mosaic_0001>

<bundles_post_ra>
// kernel: _forward_jit.1
= control target key start
LH: loop header
LB: loop body
LE: loop exit
PB: predicated region body
PF: predicated region fallthrough
CT: control target
= control target key end

     0   :  { %vm82_vm0 = vcmask 523264   ;;  %vm172_vm1 = vcmask 261120   ;;  %v2631_v11 = vmov 0.0   ;;  %vm2632_vm2 = vmmov 0   ;;  %s2633_s30 = smov 32   ;;  %s2634_s24 = smov 64   ;;  %s3173_s1 = inlined_call_operand.vmem [shape: bf16[64,128], index: 1, kind: input, shape index: {}]   ;;  %s3174_s0 = inlined_call_operand.vmem [shape: f32[32,64], index: 0, kind: input, shape index: {}]   ;;  %s3175_s2 = inlined_call_operand.vmem [shape: bf16[64,32], index: 2, kind: input, shape index: {}]   ;;  %s3176_s3 = inlined_call_operand.vmem [shape: bf16[4,128,64], index: 3, kind: input, shape index: {}]   ;;  %s3177_s10 = inlined_call_operand.vmem [shape: f32[16,128], index: 10, kind: input, shape index: {}]   ;;  %s3178_s4 = inlined_call_operand.vmem [shape: bf16[32,16], index: 4, kind: input, shape index: {}]   ;;  %s3179_s5 = inlined_call_operand.vmem [shape: bf16[4,64,64], index: 5, kind: input, shape index: {}]   ;;  %s3180_s6 = inlined_call_operand.vmem [shape: bf16[16,8], index: 6, kind: input, shape index: {}]   ;;  %s3181_s7 = inlined_call_operand.vmem [shape: bf16[4,64,32], index: 7, kind: input, shape index: {}]   ;;  %s3182_s8 = inlined_call_operand.vmem [shape: bf16[4,64,64], index: 8, kind: input, shape index: {}]   ;;  %s3183_s9 = inlined_call_operand.vmem [shape: bf16[64,32], index: 9, kind: input, shape index: {}]   ;;  %s3184_s11 = inlined_call_operand.vmem [shape: f32[2,256], index: 11, kind: output, shape index: {}]  }
   0x1   :  { %v2536_v0 = vld [vmem:[%s3173_s1 + $0x18] sm:$0xff]   ;;  %v2537_v1 = vld [vmem:[%s3173_s1 + $0x10] sm:$0xff]   ;;  %v2538_v2 = vld [vmem:[%s3173_s1 + $0x8] sm:$0xff]   ;;  %vm705_vm3 = vcmask 130048   ;;  %vm1089_vm4 = vcmask 1043456   ;;  %vm1085_vm5 = vcmask 64512  }
   0x2   :  { %2260 = vmatprep.subr.bf16.mxu0 %v2536_v0  ;;  %v39_v3 = vld [vmem:[%s3174_s0] sm:$0xff]  ;;  %v40_v4 = vld [vmem:[%s3174_s0 + $0x8] sm:$0xff]  ;;  %v41_v7 = vld [vmem:[%s3174_s0 + $0x10] sm:$0xff] }
   0x3   :  { %2261 = vmatpush3.bf16.msra.mxu0 %v2536_v0  ;;  %v51_v5 = vpack.c.bf16 %v40_v4, %v39_v3  ;;  %v2539_v6 = vld [vmem:[%s3173_s1] sm:$0xff]   ;;  %v42_v8 = vld [vmem:[%s3174_s0 + $0x18] sm:$0xff]  ;;  %v2547_v13 = vld [vmem:[%s3176_s3 + $0x30] sm:$0xff]  }
   0x4   :  { %2262 = vmatprep.subr.bf16.mxu0 %v2537_v1  ;;  %v52_v9 = vpack.c.bf16 %v42_v8, %v41_v7  ;;  %v2540_v10 = vld [vmem:[%s3175_s2] sm:$0xff]   ;;  %v2545_v12 = vld [vmem:[%s3176_s3 + $0x38] sm:$0xff]   ;;  %v2549_v14 = vld [vmem:[%s3176_s3 + $0x28] sm:$0xff]  }
   0x5   :  { %2268 = vmatprep.mubr.msk.bf16.mxu0 %vm82_vm0, %v51_v5  ;;  %2276 = vmatprep.mubr.msk.bf16.mxu1 %vm172_vm1, %v2540_v10  ;;  %v2551_v15 = vld [vmem:[%s3176_s3 + $0x20] sm:$0xff]   ;;  %v2553_v16 = vld [vmem:[%s3176_s3 + $0x18] sm:$0xff]   ;;  %v2555_v17 = vld [vmem:[%s3176_s3 + $0x10] sm:$0xff]  }
   0x6   :  { %v1895_v19 = vld [vmem:[%s3177_s10] ss:$0 sm:$0xff]  ;;  %v2541_v33 = vld [vmem:[%s3175_s2 + $0x8] sm:$0xff]   ;;  %v2542_v34 = vld [vmem:[%s3175_s2 + $0x10] sm:$0xff]  }
   0x7   :  { %2263 = vmatpush3.bf16.msra.mxu0 %v2537_v1  ;;  %v2544_v35 = vld [vmem:[%s3176_s3 + $0x78] sm:$0xff]   ;;  %v2546_v36 = vld [vmem:[%s3176_s3 + $0x70] sm:$0xff]   ;;  %v2548_v38 = vld [vmem:[%s3176_s3 + $0x68] sm:$0xff]  }
   0x8   :  { %2264 = vmatprep.subr.bf16.mxu0 %v2538_v2  ;;  %v2543_v37 = vld [vmem:[%s3175_s2 + $0x18] sm:$0xff]   ;;  %v2550_v39 = vld [vmem:[%s3176_s3 + $0x60] sm:$0xff]   ;;  %v2554_v41 = vld [vmem:[%s3176_s3 + $0x50] sm:$0xff]  }
   0x9   :  { %v2552_v40 = vld [vmem:[%s3176_s3 + $0x58] sm:$0xff]   ;;  %v2556_v42 = vld [vmem:[%s3176_s3 + $0x48] sm:$0xff]   ;;  %v2558_v44 = vld [vmem:[%s3176_s3 + $0x40] sm:$0xff]  }
   0xa   :  { %v2557_v43 = vld [vmem:[%s3176_s3 + $0x8] sm:$0xff]   ;;  %v2559_v45 = vld [vmem:[%s3176_s3] sm:$0xff]   ;;  %v2560_v49 = vld [vmem:[%s3176_s3 + $0xb8] sm:$0xff]  }
   0xb   :  { %2265 = vmatpush3.bf16.msra.mxu0 %v2538_v2  ;;  %v2561_v52 = vld [vmem:[%s3176_s3 + $0xf8] sm:$0xff]   ;;  %v2562_v54 = vld [vmem:[%s3176_s3 + $0xb0] sm:$0xff]   ;;  %v2564_v56 = vld [vmem:[%s3176_s3 + $0xa8] sm:$0xff]  }
   0xc   :  { %2266 = vmatprep.subr.bf16.mxu0 %v2539_v6  ;;  %v2563_v55 = vld [vmem:[%s3176_s3 + $0xf0] sm:$0xff]   ;;  %v2565_v57 = vld [vmem:[%s3176_s3 + $0xe8] sm:$0xff]   ;;  %v2566_v58 = vld [vmem:[%s3176_s3 + $0xa0] sm:$0xff]  }
   0xd   :  { %v2567_v59 = vld [vmem:[%s3176_s3 + $0xe0] sm:$0xff]   ;;  %v2568_v60 = vld [vmem:[%s3176_s3 + $0x98] sm:$0xff]   ;;  %v2570_v63 = vld [vmem:[%s3176_s3 + $0x90] sm:$0xff]  }
   0xe   :  { %v2569_v62 = vld [vmem:[%s3176_s3 + $0xd8] sm:$0xff]   ;;  %v2571_v1 = vld [vmem:[%s3176_s3 + $0xd0] sm:$0xff]   ;;  %v2572_v2 = vld [vmem:[%s3176_s3 + $0x88] sm:$0xff]  }
   0xf   :  { %2267 = vmatpush3.bf16.msra.mxu0 %v2539_v6  ;;  %v2573_v4 = vld [vmem:[%s3176_s3 + $0xc8] sm:$0xff]   ;;  %v2574_v5 = vld [vmem:[%s3176_s3 + $0x80] sm:$0xff]  }
  0x10   :  { %2304 = vmatprep.subr.bf16.mxu0 %v2631_v11  ;;  %v2575_v7 = vld [vmem:[%s3176_s3 + $0xc0] sm:$0xff]  }
  0x11   :  { %v2576_v10 = vld [vmem:[%s3178_s4] sm:$0xff]  }
  0x12   :  { %2269 = vmatmul.mubr.msk.bf16.vlgmr.msra.gmra.mxu0 %vm82_vm0, %v52_v9 }
  0x13   :  { %2305 = vmatpush3.bf16.msra.mxu0 %v2545_v12  ;;  %2320 = vmatprep.mubr.msk.bf16.mxu0 %vm2632_vm2, %v2631_v11  ;;  %v2579_v12 = vld [vmem:[%s3179_s5 + $0x38] sm:$0xff]  }
  0x14   :  { %2306 = vmatprep.subr.bf16.mxu0 %v2631_v11 }
  0x17   :  { %2307 = vmatpush3.bf16.msra.mxu0 %v2547_v13  ;;  %v2581_v13 = vld [vmem:[%s3179_s5 + $0x30] sm:$0xff]  }
  0x18   :  { %2308 = vmatprep.subr.bf16.mxu0 %v2631_v11 }
  0x1b   :  { %2309 = vmatpush3.bf16.msra.mxu0 %v2549_v14 }
  0x1c   :  { %2310 = vmatprep.subr.bf16.mxu0 %v2631_v11 }
  0x1f   :  { %2311 = vmatpush3.bf16.msra.mxu0 %v2551_v15 }
  0x20   :  { %2312 = vmatprep.subr.bf16.mxu0 %v2631_v11 }
  0x23   :  { %2313 = vmatpush3.bf16.msra.mxu0 %v2553_v16 }
  0x24   :  { %2314 = vmatprep.subr.bf16.mxu0 %v2631_v11 }
  0x27   :  { %2315 = vmatpush3.bf16.msra.mxu0 %v2555_v17 }
  0x28   :  { %2316 = vmatprep.subr.bf16.mxu0 %v2631_v11 }
  0x2b   :  { %2317 = vmatpush3.bf16.msra.mxu0 %v2557_v43  ;;  %v2578_v43 = vld [vmem:[%s3179_s5 + $0x18] sm:$0xff]  }
  0x2c   :  { %2318 = vmatprep.subr.bf16.mxu0 %v2631_v11 }
  0x2f   :  { %2319 = vmatpush3.bf16.msra.mxu0 %v2559_v45  ;;  %v2582_v45 = vld [vmem:[%s3179_s5 + $0x8] sm:$0xff]  }
  0x30   :  { %2344 = vmatprep.subr.bf16.mxu0 %v2631_v11 }
  0xd2   :  { %v2270_v18 = vpop.f32.mrf.mxu0 }
  0xd3   :  { %v132_v21 = vadd.f32 %v2270_v18, %v1895_v19 }
  0xd4   :  { %v123_v20 = vpop.f32.mrf.mxu0 }
  0xd5   :  { %v124_v23 = vadd.f32 %v1895_v19, %v123_v20  ;;  %v140_v26 = vmax.f32 %v132_v21, 0.0 }
  0xd6   :  { %v2271_v22 = vpop.f32.mrf.mxu0 }
  0xd7   :  { %v135_v24 = vadd.f32 %v2271_v22, %v1895_v19  ;;  %v138_v29 = vmax.f32 %v124_v23, 0.0 }
  0xd8   :  { %v126_v25 = vpop.f32.mrf.mxu0 }
  0xd9   :  { %v141_v27 = vmax.f32 %v135_v24, 0.0  ;;  %v127_v28 = vadd.f32 %v1895_v19, %v126_v25 }
  0xdb   :  { %v139_v30 = vmax.f32 %v127_v28, 0.0  ;;  %v151_v31 = vpack.c.bf16 %v141_v27, %v140_v26 }
  0xdd   :  { %v150_v32 = vpack.c.bf16 %v139_v30, %v138_v29  ;;  %2272 = vmatprep.subr.bf16.mxu1 %v151_v31  ;;  %v1990_v29 = vld [vmem:[%s3177_s10 + $0x1] ss:$0 sm:$0xff] }
  0xde   :  { %2273 = vmatpush3.bf16.msra.mxu1 %v151_v31 }
  0xdf   :  { %2274 = vmatprep.subr.bf16.mxu1 %v150_v32 }
  0xe2   :  { %2275 = vmatpush3.bf16.msra.mxu1 %v150_v32 }
  0xe3   :  { %2284 = vmatprep.subr.bf16.mxu1 %v2631_v11 }
  0xe5   :  { %2277 = vmatmul.mubr.msk.bf16.vlgmr.msra.gmra.mxu1 %vm172_vm1, %v2541_v33 }
  0xe6   :  { %2280 = vmatprep.mubr.msk.bf16.mxu1 %vm172_vm1, %v2542_v34  ;;  %2285 = vmatpush3.bf16.msra.mxu1 %v2544_v35 }
  0xe7   :  { %2286 = vmatprep.subr.bf16.mxu1 %v2631_v11 }
  0xea   :  { %2287 = vmatpush3.bf16.msra.mxu1 %v2546_v36 }
  0xeb   :  { %2288 = vmatprep.subr.bf16.mxu1 %v2631_v11 }
  0xed   :  { %2281 = vmatmul.mubr.msk.bf16.gmra.mxu1 %vm172_vm1, %v2543_v37 }
  0xee   :  { %2289 = vmatpush3.bf16.msra.mxu1 %v2548_v38  ;;  %2300 = vmatprep.mubr.msk.bf16.mxu1 %vm2632_vm2, %v2631_v11 }
  0xef   :  { %2290 = vmatprep.subr.bf16.mxu1 %v2631_v11 }
  0xf2   :  { %2291 = vmatpush3.bf16.msra.mxu1 %v2550_v39 }
  0xf3   :  { %2292 = vmatprep.subr.bf16.mxu1 %v2631_v11 }
  0xf6   :  { %2293 = vmatpush3.bf16.msra.mxu1 %v2552_v40 }
  0xf7   :  { %2294 = vmatprep.subr.bf16.mxu1 %v2631_v11 }
  0xfa   :  { %2295 = vmatpush3.bf16.msra.mxu1 %v2554_v41 }
  0xfb   :  { %2296 = vmatprep.subr.bf16.mxu1 %v2631_v11 }
  0xfe   :  { %2297 = vmatpush3.bf16.msra.mxu1 %v2556_v42  ;;  %v2577_v42 = vld [vmem:[%s3178_s4 + $0x8] sm:$0xff]  }
  0xff   :  { %2298 = vmatprep.subr.bf16.mxu1 %v2631_v11 }
 0x102   :  { %2299 = vmatpush3.bf16.msra.mxu1 %v2558_v44  ;;  %v2580_v44 = vld [vmem:[%s3179_s5 + $0x10] sm:$0xff]  }
 0x103   :  { %2324 = vmatprep.subr.bf16.mxu1 %v2631_v11 }
 0x1a5   :  { %v2278_v46 = vpop.f32.mrf.mxu1 }
 0x1a7   :  { %v219_v47 = vpop.f32.mrf.mxu1 }
 0x1a9   :  { %v2279_v48 = vpop.f32.mrf.mxu1 }
 0x1aa   :  { %v284_v50 = vpack.c.bf16 %v2279_v48, %v2278_v46  ;;  %v2583_v46 = vld [vmem:[%s3179_s5 + $0x28] sm:$0xff]   ;;  %v2585_v48 = vld [vmem:[%s3179_s5 + $0x20] sm:$0xff]  }
 0x1ab   :  { %v222_v51 = vpop.f32.mrf.mxu1 }
 0x1ac   :  { %v266_v53 = vpack.c.bf16 %v222_v51, %v219_v47  ;;  %2301 = vmatmul.mubr.bf16.vlgmr.msra.gmra.mxu1 %v284_v50  ;;  %v2584_v47 = vld [vmem:[%s3179_s5] sm:$0xff]   ;;  %v2586_v51 = vld [vmem:[%s3179_s5 + $0x78] sm:$0xff]  }
 0x1ad   :  { %2325 = vmatpush3.bf16.msra.mxu1 %v2560_v49  ;;  %2340 = vmatprep.mubr.msk.bf16.mxu1 %vm2632_vm2, %v2631_v11  ;;  %v2282_v61 = vpop.f32.mrf.mxu1 }
 0x1ae   :  { %2321 = vmatmul.mubr.bf16.vlgmr.msra.gmra.mxu0 %v266_v53  ;;  %2326 = vmatprep.subr.bf16.mxu1 %v2631_v11 }
 0x1af   :  { %2345 = vmatpush3.bf16.msra.mxu0 %v2561_v52  ;;  %2360 = vmatprep.mubr.msk.bf16.mxu0 %vm2632_vm2, %v2631_v11  ;;  %v235_v0 = vpop.f32.mrf.mxu1 }
 0x1b0   :  { %2346 = vmatprep.subr.bf16.mxu0 %v2631_v11 }
 0x1b1   :  { %2327 = vmatpush3.bf16.msra.mxu1 %v2562_v54  ;;  %v2283_v3 = vpop.f32.mrf.mxu1 }
 0x1b2   :  { %2328 = vmatprep.subr.bf16.mxu1 %v2631_v11  ;;  %v589_v9 = vpack.c.bf16 %v2283_v3, %v2282_v61  ;;  %v2592_v61 = vld [vmem:[%s3179_s5 + $0x60] sm:$0xff]   ;;  %v2600_v3 = vld [vmem:[%s3181_s7 + $0x28] sm:$0xff]  }
 0x1b3   :  { %2347 = vmatpush3.bf16.msra.mxu0 %v2563_v55  ;;  %v238_v6 = vpop.f32.mrf.mxu1  ;;  %v2587_v55 = vld [vmem:[%s3179_s5 + $0x58] sm:$0xff]  }
 0x1b4   :  { %2348 = vmatprep.subr.bf16.mxu0 %v2631_v11  ;;  %v480_v8 = vpack.c.bf16 %v238_v6, %v235_v0 }
 0x1b5   :  { %2329 = vmatpush3.bf16.msra.mxu1 %v2564_v56  ;;  %v2588_v56 = vld [vmem:[%s3179_s5 + $0x70] sm:$0xff]  }
 0x1b6   :  { %2330 = vmatprep.subr.bf16.mxu1 %v2631_v11 }
 0x1b7   :  { %2349 = vmatpush3.bf16.msra.mxu0 %v2565_v57 }
 0x1b8   :  { %2350 = vmatprep.subr.bf16.mxu0 %v2631_v11 }
 0x1b9   :  { %2331 = vmatpush3.bf16.msra.mxu1 %v2566_v58  ;;  %v2589_v58 = vld [vmem:[%s3179_s5 + $0x50] sm:$0xff]  }
 0x1ba   :  { %2332 = vmatprep.subr.bf16.mxu1 %v2631_v11 }
 0x1bb   :  { %2351 = vmatpush3.bf16.msra.mxu0 %v2567_v59  ;;  %v2590_v59 = vld [vmem:[%s3179_s5 + $0x68] sm:$0xff]  }
 0x1bc   :  { %2352 = vmatprep.subr.bf16.mxu0 %v2631_v11 }
 0x1bd   :  { %2333 = vmatpush3.bf16.msra.mxu1 %v2568_v60  ;;  %v2591_v60 = vld [vmem:[%s3179_s5 + $0x48] sm:$0xff]  }
 0x1be   :  { %2334 = vmatprep.subr.bf16.mxu1 %v2631_v11 }
 0x1bf   :  { %2353 = vmatpush3.bf16.msra.mxu0 %v2569_v62  ;;  %v2593_v62 = vld [vmem:[%s3179_s5 + $0x40] sm:$0xff]  }
 0x1c0   :  { %2354 = vmatprep.subr.bf16.mxu0 %v2631_v11 }
 0x1c1   :  { %2335 = vmatpush3.bf16.msra.mxu1 %v2570_v63 }
 0x1c2   :  { %2336 = vmatprep.subr.bf16.mxu1 %v2631_v11 }
 0x1c3   :  { %2355 = vmatpush3.bf16.msra.mxu0 %v2571_v1  ;;  %v2596_v1 = vld [vmem:[%s3181_s7 + $0x38] sm:$0xff]  }
 0x1c4   :  { %2356 = vmatprep.subr.bf16.mxu0 %v2631_v11 }
 0x1c5   :  { %2337 = vmatpush3.bf16.msra.mxu1 %v2572_v2  ;;  %v2598_v2 = vld [vmem:[%s3181_s7 + $0x30] sm:$0xff]  }
 0x1c6   :  { %2338 = vmatprep.subr.bf16.mxu1 %v2631_v11 }
 0x1c7   :  { %2357 = vmatpush3.bf16.msra.mxu0 %v2573_v4 }
 0x1c8   :  { %2358 = vmatprep.subr.bf16.mxu0 %v2631_v11 }
 0x1c9   :  { %2339 = vmatpush3.bf16.msra.mxu1 %v2574_v5 }
 0x1cb   :  { %2359 = vmatpush3.bf16.msra.mxu0 %v2575_v7 }
 0x1cc   :  { %2341 = vmatmul.mubr.bf16.vlgmr.msra.gmra.mxu1 %v480_v8  ;;  %2370 = vmatprep.subr.bf16.mxu0 %v2631_v11 }
 0x1cd   :  { %2366 = vmatprep.mubr.msk.bf16.mxu1 %vm705_vm3, %v2576_v10 }
 0x1ce   :  { %2361 = vmatmul.mubr.bf16.vlgmr.msra.gmra.mxu0 %v589_v9 }
 0x1cf   :  { %2378 = vmatprep.mubr.msk.bf16.mxu0 %vm2632_vm2, %v2631_v11  ;;  %2371 = vmatpush3.bf16.msra.mxu0 %v2579_v12 }
 0x1d0   :  { %2372 = vmatprep.subr.bf16.mxu0 %v2631_v11 }
 0x1d3   :  { %2373 = vmatpush3.bf16.msra.mxu0 %v2581_v13 }
 0x1d4   :  { %2374 = vmatprep.subr.bf16.mxu0 %v2631_v11 }
 0x1d7   :  { %2375 = vmatpush3.bf16.msra.mxu0 %v2583_v46  ;;  %v2608_v46 = vld [vmem:[%s3181_s7 + $0x48] sm:$0xff]  }
 0x1d8   :  { %2376 = vmatprep.subr.bf16.mxu0 %v2631_v11 }
 0x1db   :  { %2377 = vmatpush3.bf16.msra.mxu0 %v2585_v48 }
 0x1dc   :  { %2394 = vmatprep.subr.bf16.mxu0 %v2631_v11 }
 0x26c   :  { %v367_v14 = vpop.f32.mrf.mxu1 }
 0x26e   :  { %v2302_v15 = vpop.f32.mrf.mxu1  ;;  %v456_v16 = vpop.f32.mrf.mxu0 }
 0x26f   :  { %v457_v22 = vadd.f32 %v456_v16, %v367_v14 }
 0x270   :  { %v370_v17 = vpop.f32.mrf.mxu1  ;;  %v2322_v18 = vpop.f32.mrf.mxu0 }
 0x272   :  { %v2303_v19 = vpop.f32.mrf.mxu1  ;;  %v459_v20 = vpop.f32.mrf.mxu0 }
 0x273   :  { %v460_v27 = vadd.f32 %v459_v20, %v370_v17  ;;  %v2039_v19 = vld [vmem:[%s3177_s10 + $0x2] ss:$0 sm:$0xff] }
 0x274   :  { %v2323_v21 = vpop.f32.mrf.mxu0 }
 0x28c   :  { %v563_v23 = vpop.f32.mrf.mxu1 }
 0x28d   :  { %v570_v24 = vadd.f32 %v563_v23, %v457_v22 }
 0x28e   :  { %v2342_v25 = vpop.f32.mrf.mxu1  ;;  %v672_v26 = vpop.f32.mrf.mxu0 }
 0x28f   :  { %v679_v28 = vadd.f32 %v672_v26, %v570_v24 }
 0x290   :  { %v566_v30 = vpop.f32.mrf.mxu1  ;;  %v2362_v31 = vpop.f32.mrf.mxu0 }
 0x291   :  { %v571_v32 = vadd.f32 %v566_v30, %v460_v27  ;;  %v686_v35 = vadd.f32 %v1990_v29, %v679_v28  ;;  %v2595_v30 = vld [vmem:[%s3181_s7 + $0x18] sm:$0xff]   ;;  %v2597_v31 = vld [vmem:[%s3181_s7 + $0x10] sm:$0xff]  }
 0x292   :  { %v2343_v33 = vpop.f32.mrf.mxu1  ;;  %v675_v34 = vpop.f32.mrf.mxu0 }
 0x293   :  { %v680_v36 = vadd.f32 %v675_v34, %v571_v32  ;;  %v688_v39 = vmax.f32 %v686_v35, 0.0  ;;  %v2599_v32 = vld [vmem:[%s3181_s7 + $0x8] sm:$0xff]   ;;  %v2601_v33 = vld [vmem:[%s3181_s7] sm:$0xff]  }
 0x294   :  { %v2363_v37 = vpop.f32.mrf.mxu0  ;;  %v2602_v34 = vld [vmem:[%s3181_s7 + $0x20] sm:$0xff]  }
 0x295   :  { %v687_v38 = vadd.f32 %v1990_v29, %v680_v36  ;;  %v2594_v29 = vld [vmem:[%s3180_s6] sm:$0xff]   ;;  %v2603_v36 = vld [vmem:[%s3181_s7 + $0x78] sm:$0xff]  }
 0x297   :  { %v689_v40 = vmax.f32 %v687_v38, 0.0 }
 0x299   :  { %v694_v41 = vpack.c.bf16 %v689_v40, %v688_v39  ;;  %v2604_v39 = vld [vmem:[%s3181_s7 + $0x58] sm:$0xff]  }
 0x29b   :  { %2364 = vmatprep.subr.bf16.mxu1 %v694_v41 }
 0x29c   :  { %2365 = vmatpush3.bf16.msra.mxu1 %v694_v41 }
 0x29d   :  { %2382 = vmatprep.subr.bf16.mxu1 %v2631_v11 }
 0x29f   :  { %2367 = vmatmul.mubr.msk.bf16.vlgmr.msra.gmra.mxu1 %vm705_vm3, %v2577_v42  ;;  %v2605_v42 = vld [vmem:[%s3181_s7 + $0x70] sm:$0xff]  }
 0x2a0   :  { %2383 = vmatpush3.bf16.msra.mxu1 %v2578_v43  ;;  %2390 = vmatprep.mubr.msk.bf16.mxu1 %vm2632_vm2, %v2631_v11 }
 0x2a1   :  { %2384 = vmatprep.subr.bf16.mxu1 %v2631_v11 }
 0x2a4   :  { %2385 = vmatpush3.bf16.msra.mxu1 %v2580_v44  ;;  %v2606_v44 = vld [vmem:[%s3181_s7 + $0x50] sm:$0xff]  }
 0x2a5   :  { %2386 = vmatprep.subr.bf16.mxu1 %v2631_v11 }
 0x2a8   :  { %2387 = vmatpush3.bf16.msra.mxu1 %v2582_v45  ;;  %v2607_v45 = vld [vmem:[%s3181_s7 + $0x68] sm:$0xff]  }
 0x2a9   :  { %2388 = vmatprep.subr.bf16.mxu1 %v2631_v11 }
 0x2ac   :  { %2389 = vmatpush3.bf16.msra.mxu1 %v2584_v47  ;;  %v2609_v47 = vld [vmem:[%s3181_s7 + $0x60] sm:$0xff]  }
 0x2ad   :  { %2406 = vmatprep.subr.bf16.mxu1 %v2631_v11 }
 0x35f   :  { %v2368_v49 = vpop.f32.mrf.mxu1 }
 0x360   :  { %v923_v0 = vpack.c.bf16 %v2368_v49, %v2368_v49  ;;  %v2610_v49 = vld [vmem:[%s3181_s7 + $0x40] sm:$0xff]  }
 0x361   :  { %v746_v50 = vpop.f32.mrf.mxu1 }
 0x362   :  { %v769_v52 = vpack.c.bf16 %v746_v50, %v746_v50 }
 0x363   :  { %v2369_v53 = vpop.f32.mrf.mxu1 }
 0x364   :  { %2391 = vmatmul.mubr.msk.bf16.vlgmr.msra.gmra.mxu1 %vm82_vm0, %v769_v52  ;;  %v1001_v63 = vpack.c.bf16 %v2369_v53, %v2369_v53  ;;  %v2612_v52 = vld [vmem:[%s3182_s8 + $0x10] sm:$0xff]   ;;  %v2613_v53 = vld [vmem:[%s3182_s8 + $0x8] sm:$0xff]  }
 0x365   :  { %2407 = vmatpush3.bf16.msra.mxu1 %v2586_v51  ;;  %v749_v54 = vpop.f32.mrf.mxu1  ;;  %2414 = vmatprep.mubr.msk.bf16.mxu1 %vm2632_vm2, %v2631_v11  ;;  %v2611_v51 = vld [vmem:[%s3182_s8 + $0x18] sm:$0xff]  }
 0x366   :  { %v779_v57 = vpack.c.bf16 %v749_v54, %v749_v54  ;;  %2408 = vmatprep.subr.bf16.mxu1 %v2631_v11 }
 0x368   :  { %2379 = vmatmul.mubr.msk.bf16.vlgmr.msra.gmra.mxu0 %vm82_vm0, %v779_v57 }
 0x369   :  { %2395 = vmatpush3.bf16.msra.mxu0 %v2587_v55  ;;  %2409 = vmatpush3.bf16.msra.mxu1 %v2588_v56 }
 0x36a   :  { %2396 = vmatprep.subr.bf16.mxu0 %v2631_v11  ;;  %2410 = vmatprep.subr.bf16.mxu1 %v2631_v11 }
 0x36b   :  { %2402 = vmatprep.mubr.msk.bf16.mxu0 %vm2632_vm2, %v2631_v11 }
 0x36d   :  { %2397 = vmatpush3.bf16.msra.mxu0 %v2589_v58  ;;  %2411 = vmatpush3.bf16.msra.mxu1 %v2590_v59 }
 0x36e   :  { %2398 = vmatprep.subr.bf16.mxu0 %v2631_v11  ;;  %2412 = vmatprep.subr.bf16.mxu1 %v2631_v11 }
 0x371   :  { %2399 = vmatpush3.bf16.msra.mxu0 %v2591_v60  ;;  %2413 = vmatpush3.bf16.msra.mxu1 %v2592_v61 }
 0x372   :  { %2400 = vmatprep.subr.bf16.mxu0 %v2631_v11  ;;  %2424 = vmatprep.subr.bf16.mxu1 %v2631_v11 }
 0x374   :  { %2415 = vmatmul.mubr.msk.bf16.vlgmr.msra.gmra.mxu1 %vm82_vm0, %v1001_v63 }
 0x375   :  { %2401 = vmatpush3.bf16.msra.mxu0 %v2593_v62  ;;  %2432 = vmatprep.mubr.msk.bf16.mxu1 %vm2632_vm2, %v2631_v11  ;;  %v2614_v62 = vld [vmem:[%s3182_s8] sm:$0xff]  }
 0x376   :  { %2418 = vmatprep.subr.bf16.mxu0 %v2631_v11  ;;  %2425 = vmatpush3.bf16.msra.mxu1 %v2596_v1 }
 0x377   :  { %2426 = vmatprep.subr.bf16.mxu1 %v2631_v11 }
 0x378   :  { %2403 = vmatmul.mubr.msk.bf16.vlgmr.msra.gmra.mxu0 %vm82_vm0, %v923_v0 }
 0x379   :  { %2420 = vmatprep.mubr.msk.bf16.mxu0 %vm2632_vm2, %v2631_v11 }
 0x37a   :  { %2427 = vmatpush3.bf16.msra.mxu1 %v2598_v2 }
 0x37b   :  { %2428 = vmatprep.subr.bf16.mxu1 %v2631_v11 }
 0x37e   :  { %2429 = vmatpush3.bf16.msra.mxu1 %v2600_v3 }
 0x37f   :  { %2430 = vmatprep.subr.bf16.mxu1 %v2631_v11 }
 0x382   :  { %2431 = vmatpush3.bf16.msra.mxu1 %v2602_v34  ;;  %v2623_v34 = vld [vmem:[%s3182_s8 + $0x78] sm:$0xff]  }
 0x383   :  { %2448 = vmatprep.subr.bf16.mxu1 %v2631_v11 }
 0x424   :  { %v908_v4 = vpop.f32.mrf.mxu1 }
 0x426   :  { %v2392_v5 = vpop.f32.mrf.mxu1 }
 0x428   :  { %v841_v6 = vpop.f32.mrf.mxu0  ;;  %v911_v7 = vpop.f32.mrf.mxu1 }
 0x429   :  { %v909_v15 = vadd.f32 %v908_v4, %v841_v6  ;;  %v2615_v4 = vld [vmem:[%s3182_s8 + $0x38] sm:$0xff]   ;;  %v2086_v7 = vld [vmem:[%s3177_s10 + $0x3] ss:$0 sm:$0xff] }
 0x42a   :  { %v2380_v8 = vpop.f32.mrf.mxu0  ;;  %v2393_v9 = vpop.f32.mrf.mxu1 }
 0x42b   :  { %v2616_v9 = vld [vmem:[%s3182_s8 + $0x30] sm:$0xff]  }
 0x42c   :  { %v844_v10 = vpop.f32.mrf.mxu0 }
 0x42e   :  { %v2381_v12 = vpop.f32.mrf.mxu0 }
 0x434   :  { %v1063_v13 = vpop.f32.mrf.mxu1 }
 0x436   :  { %v2416_v14 = vpop.f32.mrf.mxu1 }
 0x438   :  { %v985_v16 = vpop.f32.mrf.mxu0  ;;  %v1066_v17 = vpop.f32.mrf.mxu1 }
 0x439   :  { %v991_v18 = vadd.f32 %v985_v16, %v909_v15 }
 0x43a   :  { %v2404_v20 = vpop.f32.mrf.mxu0  ;;  %v2417_v21 = vpop.f32.mrf.mxu1 }
 0x43b   :  { %v1069_v22 = vadd.f32 %v1063_v13, %v991_v18  ;;  %v2617_v20 = vld [vmem:[%s3182_s8 + $0x28] sm:$0xff]   ;;  %v2618_v21 = vld [vmem:[%s3182_s8 + $0x20] sm:$0xff]  }
 0x43c   :  { %v988_v23 = vpop.f32.mrf.mxu0 }
 0x43d   :  { %v1075_v24 = vadd.f32 %v2039_v19, %v1069_v22  ;;  %v2619_v22 = vld [vmem:[%s3182_s8 + $0x58] sm:$0xff]   ;;  %v2620_v23 = vld [vmem:[%s3182_s8 + $0x50] sm:$0xff]  }
 0x43e   :  { %v2405_v25 = vpop.f32.mrf.mxu0 }
 0x43f   :  { %v1076_v26 = vmax.f32 %v1075_v24, 0.0  ;;  %v2087_v24 = vld [vmem:[%s3177_s10 + $0x4] ss:$0 sm:$0xff] }
 0x441   :  { %v1079_v27 = vpack.c.bf16 %v1076_v26, %v1076_v26 }
 0x443   :  { %v1091_v28 = vsel %vm1089_vm4, %v1079_v27, 0 }
 0x444   :  { %2419 = vmatpush3.bf16.msra.mxu0 %v1091_v28 }
 0x445   :  { %2436 = vmatprep.subr.bf16.mxu0 %v2631_v11 }
 0x447   :  { %2421 = vmatmul.mubr.msk.bf16.vlgmr.msra.gmra.mxu0 %vm1085_vm5, %v2594_v29 }
 0x448   :  { %2437 = vmatpush3.bf16.msra.mxu0 %v2595_v30  ;;  %2444 = vmatprep.mubr.msk.bf16.mxu0 %vm2632_vm2, %v2631_v11 }
 0x449   :  { %2438 = vmatprep.subr.bf16.mxu0 %v2631_v11 }
 0x44c   :  { %2439 = vmatpush3.bf16.msra.mxu0 %v2597_v31 }
 0x44d   :  { %2440 = vmatprep.subr.bf16.mxu0 %v2631_v11 }
 0x450   :  { %2441 = vmatpush3.bf16.msra.mxu0 %v2599_v32  ;;  %v2621_v32 = vld [vmem:[%s3182_s8 + $0x48] sm:$0xff]  }
 0x451   :  { %2442 = vmatprep.subr.bf16.mxu0 %v2631_v11 }
 0x454   :  { %2443 = vmatpush3.bf16.msra.mxu0 %v2601_v33  ;;  %v2622_v33 = vld [vmem:[%s3182_s8 + $0x40] sm:$0xff]  }
 0x455   :  { %2460 = vmatprep.subr.bf16.mxu0 %v2631_v11 }
 0x507   :  { %v1127_v35 = vpop.f32.mrf.mxu0 }
 0x508   :  { %v1142_v37 = vpack.c.bf16 %v1127_v35, %v1127_v35  ;;  %v2624_v35 = vld [vmem:[%s3182_s8 + $0x70] sm:$0xff]  }
 0x509   :  { %v2422_v38 = vpop.f32.mrf.mxu0 }
 0x50a   :  { %v1153_v40 = vrot.slane %v1142_v37, 2  ;;  %2445 = vmatmul.mubr.msk.bf16.vlgmr.msra.gmra.mxu0 %vm82_vm0, %v1142_v37 }
 0x50b   :  { %2461 = vmatpush3.bf16.msra.mxu0 %v2603_v36  ;;  %v1130_v41 = vpop.f32.mrf.mxu0  ;;  %2468 = vmatprep.mubr.msk.bf16.mxu0 %vm2632_vm2, %v2631_v11  ;;  %v2101_v36 = vld [vmem:[%s3177_s10 + $0x5] ss:$0 sm:$0xff] }
 0x50c   :  { %2433 = vmatmul.mubr.msk.bf16.vlgmr.msra.gmra.mxu1 %vm82_vm0, %v1153_v40  ;;  %2462 = vmatprep.subr.bf16.mxu0 %v2631_v11  ;;  %v1297_v48 = vpack.c.bf16 %v1130_v41, %v1130_v41 }
 0x50d   :  { %2449 = vmatpush3.bf16.msra.mxu1 %v2604_v39  ;;  %v2423_v43 = vpop.f32.mrf.mxu0  ;;  %2456 = vmatprep.mubr.msk.bf16.mxu1 %vm2632_vm2, %v2631_v11 }
 0x50e   :  { %2450 = vmatprep.subr.bf16.mxu1 %v2631_v11  ;;  %v1376_v50 = vrot.slane %v1297_v48, 2 }
 0x50f   :  { %2463 = vmatpush3.bf16.msra.mxu0 %v2605_v42 }
 0x510   :  { %2464 = vmatprep.subr.bf16.mxu0 %v2631_v11 }
 0x511   :  { %2451 = vmatpush3.bf16.msra.mxu1 %v2606_v44 }
 0x512   :  { %2452 = vmatprep.subr.bf16.mxu1 %v2631_v11 }
 0x513   :  { %2465 = vmatpush3.bf16.msra.mxu0 %v2607_v45  ;;  %v2625_v45 = vld [vmem:[%s3182_s8 + $0x68] sm:$0xff]  }
 0x514   :  { %2466 = vmatprep.subr.bf16.mxu0 %v2631_v11 }
 0x515   :  { %2453 = vmatpush3.bf16.msra.mxu1 %v2608_v46  ;;  %v2626_v46 = vld [vmem:[%s3182_s8 + $0x60] sm:$0xff]  }
 0x516   :  { %2454 = vmatprep.subr.bf16.mxu1 %v2631_v11 }
 0x517   :  { %2467 = vmatpush3.bf16.msra.mxu0 %v2609_v47  ;;  %v2627_v47 = vld [vmem:[%s3183_s9 + $0x18] sm:$0xff]  }
 0x518   :  { %2484 = vmatprep.subr.bf16.mxu0 %v2631_v11 }
 0x519   :  { %2455 = vmatpush3.bf16.msra.mxu1 %v2610_v49  ;;  %v2115_v49 = vld [vmem:[%s3177_s10 + $0x6] ss:$0 sm:$0xff] }
 0x51a   :  { %2469 = vmatmul.mubr.msk.bf16.vlgmr.msra.gmra.mxu0 %vm82_vm0, %v1376_v50  ;;  %2472 = vmatprep.subr.bf16.mxu1 %v2631_v11 }
 0x51b   :  { %2492 = vmatprep.mubr.msk.bf16.mxu0 %vm2632_vm2, %v2631_v11  ;;  %2485 = vmatpush3.bf16.msra.mxu0 %v2615_v4 }
 0x51c   :  { %2457 = vmatmul.mubr.msk.bf16.vlgmr.msra.gmra.mxu1 %vm82_vm0, %v1297_v48  ;;  %2486 = vmatprep.subr.bf16.mxu0 %v2631_v11  ;;  %v2628_v48 = vld [vmem:[%s3183_s9 + $0x10] sm:$0xff]  }
 0x51d   :  { %2480 = vmatprep.mubr.msk.bf16.mxu1 %vm2632_vm2, %v2631_v11  ;;  %2473 = vmatpush3.bf16.msra.mxu1 %v2611_v51 }
 0x51e   :  { %2474 = vmatprep.subr.bf16.mxu1 %v2631_v11 }
 0x51f   :  { %2487 = vmatpush3.bf16.msra.mxu0 %v2616_v9 }
 0x520   :  { %2488 = vmatprep.subr.bf16.mxu0 %v2631_v11 }
 0x521   :  { %2475 = vmatpush3.bf16.msra.mxu1 %v2612_v52 }
 0x522   :  { %2476 = vmatprep.subr.bf16.mxu1 %v2631_v11 }
 0x523   :  { %2489 = vmatpush3.bf16.msra.mxu0 %v2617_v20 }
 0x524   :  { %2490 = vmatprep.subr.bf16.mxu0 %v2631_v11 }
 0x525   :  { %2477 = vmatpush3.bf16.msra.mxu1 %v2613_v53 }
 0x526   :  { %2478 = vmatprep.subr.bf16.mxu1 %v2631_v11 }
 0x527   :  { %2491 = vmatpush3.bf16.msra.mxu0 %v2618_v21 }
 0x528   :  { %2508 = vmatprep.subr.bf16.mxu0 %v2631_v11 }
 0x529   :  { %2479 = vmatpush3.bf16.msra.mxu1 %v2614_v62 }
 0x52a   :  { %2496 = vmatprep.subr.bf16.mxu1 %v2631_v11 }
 0x5ca   :  { %v1282_v54 = vpop.f32.mrf.mxu0 }
 0x5cc   :  { %v1215_v55 = vpop.f32.mrf.mxu1  ;;  %v2446_v56 = vpop.f32.mrf.mxu0 }
 0x5cd   :  { %v1283_v0 = vadd.f32 %v1282_v54, %v1215_v55 }
 0x5ce   :  { %v2434_v57 = vpop.f32.mrf.mxu1  ;;  %v1285_v58 = vpop.f32.mrf.mxu0 }
 0x5cf   :  { %v2629_v57 = vld [vmem:[%s3183_s9 + $0x8] sm:$0xff]   ;;  %v2630_v58 = vld [vmem:[%s3183_s9] sm:$0xff]  }
 0x5d0   :  { %v1218_v59 = vpop.f32.mrf.mxu1  ;;  %v2447_v60 = vpop.f32.mrf.mxu0 }
 0x5d1   :  { %v2129_v59 = vld [vmem:[%s3177_s10 + $0x7] ss:$0 sm:$0xff] }
 0x5d2   :  { %v2435_v61 = vpop.f32.mrf.mxu1 }
 0x5da   :  { %v1438_v63 = vpop.f32.mrf.mxu0 }
 0x5dc   :  { %v1359_v1 = vpop.f32.mrf.mxu1  ;;  %v2470_v2 = vpop.f32.mrf.mxu0 }
 0x5dd   :  { %v1365_v3 = vadd.f32 %v1359_v1, %v1283_v0 }
 0x5de   :  { %v2458_v5 = vpop.f32.mrf.mxu1  ;;  %v1441_v6 = vpop.f32.mrf.mxu0 }
 0x5df   :  { %v1444_v8 = vadd.f32 %v1438_v63, %v1365_v3 }
 0x5e0   :  { %v1362_v10 = vpop.f32.mrf.mxu1  ;;  %v2471_v12 = vpop.f32.mrf.mxu0 }
 0x5e1   :  { %v1450_v13 = vadd.f32 %v2086_v7, %v1444_v8 }
 0x5e2   :  { %v2459_v14 = vpop.f32.mrf.mxu1 }
 0x5e3   :  { %v1451_v15 = vmax.f32 %v1450_v13, 0.0 }
 0x5e5   :  { %v1453_v16 = vrot.slane %v1451_v15, 2 }
 0x5e7   :  { %1454 = vrot.lane.b32.xlu0 %v1453_v16, %s2633_s30 }
 0x659   :  { %v1455_v17 = vpop.permute.xlu0 %1454 }
 0x65a   :  { %v3082_v18 = vsel %vm172_vm1, %v1451_v15, %v1455_v17 }
 0x65b   :  { %v1466_v19 = vpack.c.bf16 %v3082_v18, %v3082_v18 }
 0x65d   :  { %2481 = vmatmul.mubr.msk.bf16.vlgmr.msra.gmra.mxu1 %vm82_vm0, %v1466_v19 }
 0x65e   :  { %2504 = vmatprep.mubr.msk.bf16.mxu1 %vm2632_vm2, %v2631_v11  ;;  %2497 = vmatpush3.bf16.msra.mxu1 %v2619_v22 }
 0x65f   :  { %2498 = vmatprep.subr.bf16.mxu1 %v2631_v11 }
 0x662   :  { %2499 = vmatpush3.bf16.msra.mxu1 %v2620_v23 }
 0x663   :  { %2500 = vmatprep.subr.bf16.mxu1 %v2631_v11 }
 0x666   :  { %2501 = vmatpush3.bf16.msra.mxu1 %v2621_v32 }
 0x667   :  { %2502 = vmatprep.subr.bf16.mxu1 %v2631_v11 }
 0x66a   :  { %2503 = vmatpush3.bf16.msra.mxu1 %v2622_v33 }
 0x66b   :  { %2520 = vmatprep.subr.bf16.mxu1 %v2631_v11 }
 0x71d   :  { %v1533_v25 = vpop.f32.mrf.mxu1 }
 0x71e   :  { %v1534_v26 = vadd.f32 %v2087_v24, %v1533_v25 }
 0x71f   :  { %v2482_v27 = vpop.f32.mrf.mxu1 }
 0x720   :  { %v1539_v28 = vmax.f32 %v1534_v26, 0.0 }
 0x721   :  { %v1536_v29 = vpop.f32.mrf.mxu1 }
 0x722   :  { %v1549_v30 = vpack.c.bf16 %v1539_v28, %v1539_v28 }
 0x723   :  { %v2483_v31 = vpop.f32.mrf.mxu1 }
 0x724   :  { %2493 = vmatmul.mubr.msk.bf16.vlgmr.msra.gmra.mxu0 %vm82_vm0, %v1549_v30 }
 0x725   :  { %2516 = vmatprep.mubr.msk.bf16.mxu0 %vm2632_vm2, %v2631_v11  ;;  %2509 = vmatpush3.bf16.msra.mxu0 %v2623_v34 }
 0x726   :  { %2510 = vmatprep.subr.bf16.mxu0 %v2631_v11 }
 0x729   :  { %2511 = vmatpush3.bf16.msra.mxu0 %v2624_v35 }
 0x72a   :  { %2512 = vmatprep.subr.bf16.mxu0 %v2631_v11 }
 0x72d   :  { %2513 = vmatpush3.bf16.msra.mxu0 %v2625_v45 }
 0x72e   :  { %2514 = vmatprep.subr.bf16.mxu0 %v2631_v11 }
 0x731   :  { %2515 = vmatpush3.bf16.msra.mxu0 %v2626_v46 }
 0x7e4   :  { %v1616_v37 = vpop.f32.mrf.mxu0 }
 0x7e5   :  { %v1617_v38 = vadd.f32 %v2101_v36, %v1616_v37 }
 0x7e6   :  { %v2494_v39 = vpop.f32.mrf.mxu0 }
 0x7e7   :  { %v1622_v40 = vadd.f32 %v1617_v38, %v3082_v18 }
 0x7e8   :  { %v1619_v41 = vpop.f32.mrf.mxu0 }
 0x7e9   :  { %v1623_v42 = vmax.f32 %v1622_v40, 0.0 }
 0x7ea   :  { %v2495_v43 = vpop.f32.mrf.mxu0 }
 0x7eb   :  { %v1633_v44 = vpack.c.bf16 %v1623_v42, %v1623_v42  ;;  %1874 = vrot.lane.b32.xlu0 %v1623_v42, %s2634_s24 }
 0x7ed   :  { %2505 = vmatmul.mubr.msk.bf16.vlgmr.msra.gmra.mxu1 %vm82_vm0, %v1633_v44 }
 0x7ee   :  { %2528 = vmatprep.mubr.msk.bf16.mxu1 %vm2632_vm2, %v2631_v11  ;;  %2521 = vmatpush3.bf16.msra.mxu1 %v2627_v47 }
 0x7ef   :  { %2522 = vmatprep.subr.bf16.mxu1 %v2631_v11 }
 0x7f2   :  { %2523 = vmatpush3.bf16.msra.mxu1 %v2628_v48 }
 0x7f3   :  { %2524 = vmatprep.subr.bf16.mxu1 %v2631_v11 }
 0x7f6   :  { %2525 = vmatpush3.bf16.msra.mxu1 %v2629_v57 }
 0x7f7   :  { %2526 = vmatprep.subr.bf16.mxu1 %v2631_v11  ;;  %v2135_v11 = vld [vmem:[%s3177_s10 + $0x8] ss:$0 sm:$0xff] }
 0x7fa   :  { %2527 = vmatpush3.bf16.msra.mxu1 %v2630_v58 }
 0x85d   :  { %v1875_v6 = vpop.permute.xlu0 %1874 }
 0x85e   :  { %v1877_v10 = vsel %vm82_vm0, %v3082_v18, %v1875_v6 }
 0x8ad   :  { %v1700_v50 = vpop.f32.mrf.mxu1 }
 0x8ae   :  { %v1701_v51 = vadd.f32 %v2115_v49, %v1700_v50 }
 0x8af   :  { %v2506_v52 = vpop.f32.mrf.mxu1 }
 0x8b0   :  { %v1706_v53 = vmax.f32 %v1701_v51, 0.0 }
 0x8b1   :  { %v1703_v54 = vpop.f32.mrf.mxu1 }
 0x8b2   :  { %v1716_v55 = vpack.c.bf16 %v1706_v53, %v1706_v53 }
 0x8b3   :  { %v2507_v56 = vpop.f32.mrf.mxu1 }
 0x8b4   :  { %2517 = vmatmul.mubr.msk.bf16.vlgmr.msra.gmra.mxu0 %vm82_vm0, %v1716_v55 }
 0x974   :  { %v1783_v60 = vpop.f32.mrf.mxu0 }
 0x975   :  { %v1784_v61 = vadd.f32 %v2129_v59, %v1783_v60 }
 0x976   :  { %v2518_v62 = vpop.f32.mrf.mxu0 }
 0x977   :  { %v1789_v63 = vadd.f32 %v1784_v61, %v1623_v42 }
 0x978   :  { %v1786_v0 = vpop.f32.mrf.mxu0 }
 0x979   :  { %v1790_v1 = vmax.f32 %v1789_v63, 0.0 }
 0x97a   :  { %v2519_v2 = vpop.f32.mrf.mxu0 }
 0x97b   :  { %v1799_v3 = vpack.c.bf16 %v1790_v1, %v1790_v1 }
 0x97d   :  { %2529 = vmatmul.mubr.msk.bf16.vlgmr.msra.gmra.mxu1 %vm82_vm0, %v1799_v3 }
 0xa3d   :  { %v1866_v4 = vpop.f32.mrf.mxu1 }
 0xa3e   :  { %v1867_v5 = vadd.f32 %v2135_v11, %v1866_v4 }
 0xa3f   :  { %v2530_v7 = vpop.f32.mrf.mxu1 }
 0xa40   :  { %v1872_v8 = vmax.f32 %v1867_v5, 0.0 }
 0xa41   :  { %v1869_v9 = vpop.f32.mrf.mxu1 }
 0xa42   :  { %v1878_v12 = vsel %vm172_vm1, %v1872_v8, 0.0 }
 0xa43   :  { %v1881_v13 = vcombine.low %v1877_v10, %v1878_v12  ;;  %v2531_v14 = vpop.f32.mrf.mxu1 }
 0xa45   :  { %2141 = vst.sshfl [vmem:[%s3184_s11] sm:$0x33 pattern:$0x76325410] %v1881_v13 }

</bundles_post_ra>
